<compile_context>
chip_gen: v7x
topology: tpu7x:2x2x1
jax: 0.10.0
libtpu: 0.0.40
codegen_flags: <defaults>
</compile_context>

<pallas_src>
import math
import numpy as np
import jax
import jax.numpy as jnp
from jax import lax
from jax.experimental import pallas as pl
from jax.experimental.pallas import tpu as pltpu


# ---------------------------------------------------------------------------
# In-kernel matmul helpers: bf16 MXU operands, f32 accumulation.
# Weights arrive already in bf16, so only activations pay a cast.
# ---------------------------------------------------------------------------
def _mm(a, b):
    return jnp.dot(a.astype(jnp.bfloat16), b.astype(jnp.bfloat16),
                   preferred_element_type=jnp.float32)


_NT = (((1,), (1,)), ((), ()))      # contract last dims of both: a @ b.T


def _mm_nt(a, b):
    return lax.dot_general(a.astype(jnp.bfloat16), b.astype(jnp.bfloat16),
                           _NT, preferred_element_type=jnp.float32)


# ---------------------------------------------------------------------------
# Kernel 1: fused image encoder
#   patch-embed matmul -> LayerNorm -> MLP1 -> gelu -> MLP2 -> residual
# ---------------------------------------------------------------------------
def _encoder_kernel(x_ref, wp_ref, bp_ref, w1_ref, b1_ref, w2_ref, b2_ref,
                    o_ref):
    x = _mm(x_ref[...], wp_ref[...]) + bp_ref[...]            # (tm, D) f32
    mu = jnp.mean(x, axis=-1, keepdims=True)
    var = jnp.mean((x - mu) ** 2, axis=-1, keepdims=True)
    h = (x - mu) * lax.rsqrt(var + 1e-6)                      # LN, f32 VPU
    h = _mm(h, w1_ref[...]) + b1_ref[...]
    h = jax.nn.gelu(h)                                        # EUP tanh path
    h = _mm(h, w2_ref[...]) + b2_ref[...]
    o_ref[...] = x + h


def _pick_row_tile(M):
    """One grid step at small sizes; largest divisor tile at scale."""
    if M <= 1024:
        return M
    for t in (1024, 512, 256, 128, 64, 8):
        if M % t == 0:
            return t
    return M


def pallas_fused_encoder(x, params):
    """x: (M, pdim) patch matrix -> (M, D) encoded tokens (one pallas_call)."""
    M, pdim = x.shape
    D = params["w_patch"].shape[1]
    hid = params["w_mlp1"].shape[1]
    tm = _pick_row_tile(M)
    const = lambda shape: pl.BlockSpec(shape, lambda i: (0,) * len(shape))
    return pl.pallas_call(
        _encoder_kernel,
        out_shape=jax.ShapeDtypeStruct((M, D), jnp.float32),
        grid=(M // tm,),
        in_specs=[
            pl.BlockSpec((tm, pdim), lambda i: (i, 0)),
            const((pdim, D)), const((1, D)),
            const((D, hid)), const((1, hid)),
            const((hid, D)), const((1, D)),
        ],
        out_specs=pl.BlockSpec((tm, D), lambda i: (i, 0)),
        compiler_params=pltpu.CompilerParams(
            dimension_semantics=("parallel",)),
    )(x, params["w_patch"], params["b_patch"].reshape(1, D),
      params["w_mlp1"], params["b_mlp1"].reshape(1, hid),
      params["w_mlp2"], params["b_mlp2"].reshape(1, D))


# ---------------------------------------------------------------------------
# Kernel 2: fused mask decoder + bilinear upsample, whole batch in ONE call.
#   Tokens stacked to (B*T, D), image features to (B*S, D); block-diagonal
#   additive bias keeps attention per-image.  Outputs are lane-dense and have
#   no size-1 leading dims: masks (B, H*W), ious (B, 1), low (B, S).
# ---------------------------------------------------------------------------
def _decoder_kernel(src_ref, pe_ref, tok_ref, bias_ref, nm_ref,
                    wq_ref, wk_ref, wv_ref, wo_ref,
                    wh_ref, bh_ref, wi_ref, bi_ref, kron_ref,
                    mask_ref, iou_ref, low_ref):
    B, S = low_ref.shape
    BT, D = tok_ref.shape
    T = BT // B

    src = src_ref[...] + nm_ref[...]          # (B*S, D), + dense "no-mask"
    tok = tok_ref[...]                        # (B*T, D)

    # --- token -> image cross-attention (SAM two-way transformer stand-in) ---
    q = _mm(tok, wq_ref[...])                 # (B*T, D)
    k = _mm(src + pe_ref[...], wk_ref[...])   # (B*S, D)
    v = _mm(src, wv_ref[...])                 # (B*S, D)
    s = _mm_nt(q, k) * (1.0 / math.sqrt(D)) + bias_ref[...]   # (B*T, B*S)
    m = jnp.max(s, axis=-1, keepdims=True)
    p = jnp.exp(s - m)
    p = p * pl.reciprocal(jnp.sum(p, axis=-1, keepdims=True), approx=True)
    tok_out = tok + _mm(_mm(p, v), wo_ref[...])                # (B*T, D)

    # --- per-image token extraction (B is small & static) ---
    iou_toks = jnp.concatenate(
        [tok_out[b * T:b * T + 1] for b in range(B)], axis=0)  # (B, D)
    mask_toks = jnp.concatenate(
        [tok_out[b * T + 1:b * T + 2] for b in range(B)], axis=0)

    # --- IoU head: VPU/XLU lane reduction (MXU stays free), packed (B, 1) ---
    iou_ref[...] = (jnp.sum(iou_toks * wi_ref[...], axis=-1, keepdims=True)
                    + bi_ref[...])

    # --- mask head: hyper net + per-image mask logits (1, S) each ---
    hyper = _mm(mask_toks, wh_ref[...]) + bh_ref[...]          # (B, D)
    low = jnp.concatenate(
        [_mm_nt(hyper[b:b + 1], src[b * S:(b + 1) * S]) for b in range(B)],
        axis=0)                                                # (B, S)
    low_ref[...] = low

    # --- fused bilinear upsample: one lane-dense matmul (B, S) @ (S, H*W) ---
    mask_ref[...] = _mm(low, kron_ref[...])                    # (B, H*W)


def pallas_fused_decoder(src_flat, pe_full, tok_flat, attn_bias, no_mask,
                         wq, wk, wv, wo, w_hyper, b_hyper, w_iou_row, b_iou,
                         kron, B, S, HW):
    return pl.pallas_call(
        _decoder_kernel,
        out_shape=(
            jax.ShapeDtypeStruct((B, HW), jnp.float32),   # upsampled masks
            jax.ShapeDtypeStruct((B, 1), jnp.float32),    # iou predictions
            jax.ShapeDtypeStruct((B, S), jnp.float32),    # low-res (flat)
        ),
    )(src_flat, pe_full, tok_flat, attn_bias, no_mask,
      wq, wk, wv, wo, w_hyper, b_hyper, w_iou_row, b_iou, kron)


# ---------------------------------------------------------------------------
# Bilinear interpolation (F.interpolate, align_corners=False) as one matrix.
# ---------------------------------------------------------------------------
def _bilinear_matrix(out_size, in_size):
    i = np.arange(out_size, dtype=np.float64)
    src = (i + 0.5) * (in_size / out_size) - 0.5
    src = np.clip(src, 0.0, in_size - 1)
    i0 = np.floor(src).astype(np.int64)
    i1 = np.minimum(i0 + 1, in_size - 1)
    w1 = src - i0
    w0 = 1.0 - w1
    mat = np.zeros((out_size, in_size), np.float32)
    mat[np.arange(out_size), i0] += w0.astype(np.float32)
    mat[np.arange(out_size), i1] += w1.astype(np.float32)
    return mat


def _bilinear_kron(out_hw, grid_hw):
    """K[i*gw+j, y*W+x] = R[y,i] * C[j,x] so that the flat low-res mask never
    needs an in-kernel lane->sublane reshape: masks_flat = low_flat @ K.
    TODO(synk): at real SAM scale switch to separable R @ low2d @ C."""
    H, W = out_hw
    gh, gw = grid_hw
    R = _bilinear_matrix(H, gh)              # (H, gh)
    Cc = _bilinear_matrix(W, gw).T           # (gw, W)
    K = np.kron(R.T, Cc)                     # (gh*gw, H*W)
    return jnp.asarray(K, jnp.bfloat16)


def _block_diag_bias(B, T, S):
    """Additive attention bias so stacked tokens only attend to their image."""
    ti = np.repeat(np.arange(B), T)
    si = np.repeat(np.arange(B), S)
    bias = np.where(ti[:, None] == si[None, :], 0.0, -1e30).astype(np.float32)
    return jnp.asarray(bias)


# ---------------------------------------------------------------------------
# Model glue (pure JAX, tiny tensors only).
# ---------------------------------------------------------------------------
def make_params(key, in_chans=3, patch=4, embed=128, mlp_ratio=2):
    ks = jax.random.split(key, 12)
    pdim = in_chans * patch * patch
    u = lambda k, shape, s, dt=jnp.float32: (
        jax.random.normal(k, shape, jnp.float32) * s).astype(dt)
    bf = jnp.bfloat16
    return {
        # matmul weights stored bf16 (MXU operand dtype) once, host-side.
        "w_patch": u(ks[0], (pdim, embed), 0.05, bf),
        "b_patch": jnp.zeros((embed,), jnp.float32),
        "w_mlp1": u(ks[1], (embed, embed * mlp_ratio), 0.05, bf),
        "b_mlp1": jnp.zeros((embed * mlp_ratio,), jnp.float32),
        "w_mlp2": u(ks[2], (embed * mlp_ratio, embed), 0.05, bf),
        "b_mlp2": jnp.zeros((embed,), jnp.float32),
        # prompt encoder
        "pe_gauss": u(ks[3], (2, embed // 2), 1.0),
        "corner_embed": u(ks[4], (2, embed), 0.05),
        "no_mask_embed": u(ks[5], (embed,), 0.05),
        # mask decoder
        "iou_token": u(ks[6], (1, embed), 0.05),
        "mask_token": u(ks[7], (1, embed), 0.05),
        "wq": u(ks[8], (embed, embed), 0.05, bf),
        "wk": u(ks[9], (embed, embed), 0.05, bf),
        "wv": u(ks[10], (embed, embed), 0.05, bf),
        "wo": u(ks[11], (embed, embed), 0.05, bf),
        "w_hyper": jnp.eye(embed, dtype=bf),
        "b_hyper": jnp.zeros((embed,), jnp.float32),
        "w_iou": jnp.ones((embed, 1), jnp.float32) * 0.05,
        "b_iou": jnp.zeros((1,), jnp.float32),
    }


def positional_encoding(params, coords):
    """coords in [0,1], (..., 2) -> (..., D) random-fourier PE."""
    c = 2.0 * coords - 1.0
    proj = (2.0 * jnp.pi) * (c @ params["pe_gauss"])
    return jnp.concatenate([jnp.sin(proj), jnp.cos(proj)], axis=-1)


def get_dense_pe(params, grid_hw):
    gh, gw = grid_hw
    ys = (jnp.arange(gh, dtype=jnp.float32) + 0.5) / gh
    xs = (jnp.arange(gw, dtype=jnp.float32) + 0.5) / gw
    gy, gx = jnp.meshgrid(ys, xs, indexing="ij")
    coords = jnp.stack([gx, gy], axis=-1).reshape(gh * gw, 2)
    return positional_encoding(params, coords)                 # (S, D)


def model_forward(params, images, prompts):
    """Returns stacked (image_embeddings, masks (B,1,H,W), ious (B,1),
    res_masks (B,1,gh,gw)); the torch-style per-image lists are built by the
    caller outside the jit."""
    B, C, H, W = images.shape
    pdim, D = params["w_patch"].shape
    patch = int(math.isqrt(pdim // C))
    gh, gw = H // patch, W // patch
    S = gh * gw

    # --- image encoder: one fused pallas_call ---
    x = images.reshape(B, C, gh, patch, gw, patch)
    x = jnp.transpose(x, (0, 2, 4, 1, 3, 5)).reshape(B * S, C * patch * patch)
    y = pallas_fused_encoder(x, params)                        # (B*S, D)
    image_embeddings = jnp.transpose(y.reshape(B, gh, gw, D), (0, 3, 1, 2))

    # --- prompt encoder (tiny; stays in JAX) ---
    dense_pe = get_dense_pe(params, (gh, gw))                  # (S, D)
    pe_full = jnp.tile(dense_pe, (B, 1))                       # (B*S, D)
    corners = prompts.reshape(B, 2, 2) / jnp.asarray([W, H], jnp.float32)
    sparse = positional_encoding(params, corners) + params["corner_embed"][None]
    T = 2 + sparse.shape[1]
    tokens = jnp.concatenate(
        [jnp.broadcast_to(params["iou_token"][None], (B, 1, D)),
         jnp.broadcast_to(params["mask_token"][None], (B, 1, D)),
         sparse.astype(jnp.float32)], axis=1)                  # (B, T, D)
    tok_flat = tokens.reshape(B * T, D)

    # --- fused mask decoder + upsample: ONE pallas_call for the whole batch ---
    kron = _bilinear_kron((H, W), (gh, gw))                    # (S, H*W) bf16
    attn_bias = _block_diag_bias(B, T, S)                      # (B*T, B*S) f32
    masks_flat, ious, low = pallas_fused_decoder(
        y, pe_full, tok_flat, attn_bias,
        params["no_mask_embed"].reshape(1, D),
        params["wq"], params["wk"], params["wv"], params["wo"],
        params["w_hyper"], params["b_hyper"].reshape(1, D),
        params["w_iou"].reshape(1, D), params["b_iou"].reshape(1, 1),
        kron, B, S, H * W)

    masks = masks_flat.reshape(B, 1, H, W)                     # metadata only
    res_masks = low.reshape(B, 1, gh, gw)                      # metadata only
    return image_embeddings, masks, ious, res_masks


if __name__ == "__main__":
    key = jax.random.PRNGKey(0)
    k_img, k_box, k_par = jax.random.split(key, 3)

    B, C, H, W = 2, 3, 32, 32
    images = jax.random.normal(k_img, (B, C, H, W), jnp.float32)
    # box prompts (xyxy, pixel coords), one box per image, like the torch path
    boxes = jax.random.uniform(k_box, (B, 1, 4), jnp.float32,
                               minval=0.0, maxval=float(W))
    params = make_params(k_par, in_chans=C, patch=4, embed=128)

    fwd = jax.jit(model_forward)
    image_embeddings, masks, ious_all, res_all = fwd(params, images, boxes)
    jax.block_until_ready((image_embeddings, masks, ious_all, res_all))

    # torch-style per-image lists (outside the jit, metadata/slice only)
    pred_masks = [masks[b] for b in range(B)]                  # each (1, H, W)
    ious = [ious_all[b:b + 1] for b in range(B)]               # each (1, 1)
    res_masks = [res_all[b:b + 1] for b in range(B)]           # each (1, 1, 8, 8)

    assert image_embeddings.shape == (B, 128, 8, 8)
    assert pred_masks[0].shape == (1, H, W)
    assert ious[0].shape == (1, 1)
    assert res_masks[0].shape == (1, 1, 8, 8)
    print("KERNEL_OK")
</pallas_src>

<mosaic_0001>
module attributes {stable_mosaic.version = 11 : i64} {
  func.func @_encoder_kernel(%arg0: i32, %arg1: memref<128x48xf32, #tpu.memory_space<vmem>>, %arg2: memref<48x128xbf16, #tpu.memory_space<vmem>>, %arg3: memref<1x128xf32, #tpu.memory_space<vmem>>, %arg4: memref<128x256xbf16, #tpu.memory_space<vmem>>, %arg5: memref<1x256xf32, #tpu.memory_space<vmem>>, %arg6: memref<256x128xbf16, #tpu.memory_space<vmem>>, %arg7: memref<1x128xf32, #tpu.memory_space<vmem>>, %arg8: memref<128x128xf32, #tpu.memory_space<vmem>>) attributes {dimension_semantics = [#tpu.dimension_semantics<parallel>], iteration_bounds = array<i64: 1>, scalar_prefetch = 0 : i64, scratch_operands = 0 : i64, tpu.core_type = #tpu.core_type<tc>, window_params = [{transform_indices = @transform_0, window_bounds = array<i64: 128, 48>}, {pipeline_mode = #tpu.pipeline_mode<synchronous>, transform_indices = @transform_1, window_bounds = array<i64: 48, 128>}, {pipeline_mode = #tpu.pipeline_mode<synchronous>, transform_indices = @transform_2, window_bounds = array<i64: 1, 128>}, {pipeline_mode = #tpu.pipeline_mode<synchronous>, transform_indices = @transform_3, window_bounds = array<i64: 128, 256>}, {pipeline_mode = #tpu.pipeline_mode<synchronous>, transform_indices = @transform_4, window_bounds = array<i64: 1, 256>}, {pipeline_mode = #tpu.pipeline_mode<synchronous>, transform_indices = @transform_5, window_bounds = array<i64: 256, 128>}, {pipeline_mode = #tpu.pipeline_mode<synchronous>, transform_indices = @transform_6, window_bounds = array<i64: 1, 128>}, {transform_indices = @transform_7, window_bounds = array<i64: 128, 128>}]} {
    %c0 = arith.constant 0 : index
    %c0_0 = arith.constant 0 : index
    %0 = vector.load %arg1[%c0, %c0_0] : memref<128x48xf32, #tpu.memory_space<vmem>>, vector<128x48xf32>
    %c0_1 = arith.constant 0 : index
    %c0_2 = arith.constant 0 : index
    %1 = vector.load %arg2[%c0_1, %c0_2] : memref<48x128xbf16, #tpu.memory_space<vmem>>, vector<48x128xbf16>
    %2 = arith.truncf %0 : vector<128x48xf32> to vector<128x48xbf16>
    %cst = arith.constant dense<0.000000e+00> : vector<128x128xf32>
    %3 = tpu.matmul %2, %1, %cst {dimension_numbers = #tpu.dot_dimension_numbers<[1], [0], [0], [1], [0, 0, 1, 1], [], []>} : vector<128x48xbf16>, vector<48x128xbf16>, vector<128x128xf32> -> vector<128x128xf32>
    %c0_3 = arith.constant 0 : index
    %c0_4 = arith.constant 0 : index
    %4 = vector.load %arg3[%c0_3, %c0_4] : memref<1x128xf32, #tpu.memory_space<vmem>>, vector<1x128xf32>
    %5 = vector.broadcast %4 : vector<1x128xf32> to vector<128x128xf32>
    %6 = arith.addf %3, %5 : vector<128x128xf32>
    %cst_5 = arith.constant dense<0.000000e+00> : vector<128xf32>
    %7 = vector.multi_reduction <add>, %6, %cst_5 [1] : vector<128x128xf32> to vector<128xf32>
    %8 = vector.shape_cast %7 : vector<128xf32> to vector<128x1xf32>
    %cst_6 = arith.constant 1.280000e+02 : f32
    %9 = vector.broadcast %cst_6 : f32 to vector<128x1xf32>
    %10 = arith.divf %8, %9 : vector<128x1xf32>
    %11 = vector.broadcast %10 : vector<128x1xf32> to vector<128x128xf32>
    %12 = arith.subf %6, %11 : vector<128x128xf32>
    %13 = arith.mulf %12, %12 : vector<128x128xf32>
    %cst_7 = arith.constant dense<0.000000e+00> : vector<128xf32>
    %14 = vector.multi_reduction <add>, %13, %cst_7 [1] : vector<128x128xf32> to vector<128xf32>
    %15 = vector.shape_cast %14 : vector<128xf32> to vector<128x1xf32>
    %cst_8 = arith.constant 1.280000e+02 : f32
    %16 = vector.broadcast %cst_8 : f32 to vector<128x1xf32>
    %17 = arith.divf %15, %16 : vector<128x1xf32>
    %18 = vector.broadcast %10 : vector<128x1xf32> to vector<128x128xf32>
    %19 = arith.subf %6, %18 : vector<128x128xf32>
    %cst_9 = arith.constant 9.99999997E-7 : f32
    %20 = vector.broadcast %cst_9 : f32 to vector<128x1xf32>
    %21 = arith.addf %17, %20 : vector<128x1xf32>
    %22 = math.rsqrt %21 : vector<128x1xf32>
    %23 = vector.broadcast %22 : vector<128x1xf32> to vector<128x128xf32>
    %24 = arith.mulf %19, %23 : vector<128x128xf32>
    %c0_10 = arith.constant 0 : index
    %c0_11 = arith.constant 0 : index
    %25 = vector.load %arg4[%c0_10, %c0_11] : memref<128x256xbf16, #tpu.memory_space<vmem>>, vector<128x256xbf16>
    %26 = arith.truncf %24 : vector<128x128xf32> to vector<128x128xbf16>
    %cst_12 = arith.constant dense<0.000000e+00> : vector<128x256xf32>
    %27 = tpu.matmul %26, %25, %cst_12 {dimension_numbers = #tpu.dot_dimension_numbers<[1], [0], [0], [1], [0, 0, 1, 1], [], []>} : vector<128x128xbf16>, vector<128x256xbf16>, vector<128x256xf32> -> vector<128x256xf32>
    %c0_13 = arith.constant 0 : index
    %c0_14 = arith.constant 0 : index
    %28 = vector.load %arg5[%c0_13, %c0_14] : memref<1x256xf32, #tpu.memory_space<vmem>>, vector<1x256xf32>
    %29 = vector.broadcast %28 : vector<1x256xf32> to vector<128x256xf32>
    %30 = arith.addf %27, %29 : vector<128x256xf32>
    %31 = arith.mulf %30, %30 : vector<128x256xf32>
    %32 = arith.mulf %30, %31 : vector<128x256xf32>
    %cst_15 = arith.constant 4.471500e-02 : f32
    %33 = vector.broadcast %cst_15 : f32 to vector<128x256xf32>
    %34 = arith.mulf %33, %32 : vector<128x256xf32>
    %35 = arith.addf %30, %34 : vector<128x256xf32>
    %cst_16 = arith.constant 0.797884583 : f32
    %36 = vector.broadcast %cst_16 : f32 to vector<128x256xf32>
    %37 = arith.mulf %36, %35 : vector<128x256xf32>
    %38 = math.tanh %37 : vector<128x256xf32>
    %cst_17 = arith.constant 1.000000e+00 : f32
    %39 = vector.broadcast %cst_17 : f32 to vector<128x256xf32>
    %40 = arith.addf %39, %38 : vector<128x256xf32>
    %cst_18 = arith.constant 5.000000e-01 : f32
    %41 = vector.broadcast %cst_18 : f32 to vector<128x256xf32>
    %42 = arith.mulf %41, %40 : vector<128x256xf32>
    %43 = arith.mulf %30, %42 : vector<128x256xf32>
    %c0_19 = arith.constant 0 : index
    %c0_20 = arith.constant 0 : index
    %44 = vector.load %arg6[%c0_19, %c0_20] : memref<256x128xbf16, #tpu.memory_space<vmem>>, vector<256x128xbf16>
    %45 = arith.truncf %43 : vector<128x256xf32> to vector<128x256xbf16>
    %cst_21 = arith.constant dense<0.000000e+00> : vector<128x128xf32>
    %46 = tpu.matmul %45, %44, %cst_21 {dimension_numbers = #tpu.dot_dimension_numbers<[1], [0], [0], [1], [0, 0, 1, 1], [], []>} : vector<128x256xbf16>, vector<256x128xbf16>, vector<128x128xf32> -> vector<128x128xf32>
    %c0_22 = arith.constant 0 : index
    %c0_23 = arith.constant 0 : index
    %47 = vector.load %arg7[%c0_22, %c0_23] : memref<1x128xf32, #tpu.memory_space<vmem>>, vector<1x128xf32>
    %48 = vector.broadcast %47 : vector<1x128xf32> to vector<128x128xf32>
    %49 = arith.addf %46, %48 : vector<128x128xf32>
    %50 = arith.addf %6, %49 : vector<128x128xf32>
    %c0_24 = arith.constant 0 : index
    %c0_25 = arith.constant 0 : index
    %51 = vector.load %arg8[%c0_24, %c0_25] : memref<128x128xf32, #tpu.memory_space<vmem>>, vector<128x128xf32>
    tpu.vector_store %arg8[%c0_24, %c0_25], %50 {strides = array<i32>} : memref<128x128xf32, #tpu.memory_space<vmem>>, vector<128x128xf32>,
    return
  }
  func.func @transform_0(%arg0: i32) -> (i32, i32) {
    %c0_i32 = arith.constant 0 : i32
    %c0_i32_0 = arith.constant 0 : i32
    return %arg0, %c0_i32 : i32, i32
  }
  func.func @transform_1(%arg0: i32) -> (i32, i32) {
    %c0_i32 = arith.constant 0 : i32
    %c0_i32_0 = arith.constant 0 : i32
    %c0_i32_1 = arith.constant 0 : i32
    return %c0_i32, %c0_i32_0 : i32, i32
  }
  func.func @transform_2(%arg0: i32) -> (i32, i32) {
    %c0_i32 = arith.constant 0 : i32
    %c0_i32_0 = arith.constant 0 : i32
    %c0_i32_1 = arith.constant 0 : i32
    return %c0_i32, %c0_i32_0 : i32, i32
  }
  func.func @transform_3(%arg0: i32) -> (i32, i32) {
    %c0_i32 = arith.constant 0 : i32
    %c0_i32_0 = arith.constant 0 : i32
    %c0_i32_1 = arith.constant 0 : i32
    return %c0_i32, %c0_i32_0 : i32, i32
  }
  func.func @transform_4(%arg0: i32) -> (i32, i32) {
    %c0_i32 = arith.constant 0 : i32
    %c0_i32_0 = arith.constant 0 : i32
    %c0_i32_1 = arith.constant 0 : i32
    return %c0_i32, %c0_i32_0 : i32, i32
  }
  func.func @transform_5(%arg0: i32) -> (i32, i32) {
    %c0_i32 = arith.constant 0 : i32
    %c0_i32_0 = arith.constant 0 : i32
    %c0_i32_1 = arith.constant 0 : i32
    return %c0_i32, %c0_i32_0 : i32, i32
  }
  func.func @transform_6(%arg0: i32) -> (i32, i32) {
    %c0_i32 = arith.constant 0 : i32
    %c0_i32_0 = arith.constant 0 : i32
    %c0_i32_1 = arith.constant 0 : i32
    return %c0_i32, %c0_i32_0 : i32, i32
  }
  func.func @transform_7(%arg0: i32) -> (i32, i32) {
    %c0_i32 = arith.constant 0 : i32
    %c0_i32_0 = arith.constant 0 : i32
    return %arg0, %c0_i32 : i32, i32
  }
}

module attributes {stable_mosaic.version = 11 : i64} {
  func.func @_decoder_kernel(%arg0: memref<128x128xf32, #tpu.memory_space<vmem>>, %arg1: memref<128x128xf32, #tpu.memory_space<vmem>>, %arg2: memref<8x128xf32, #tpu.memory_space<vmem>>, %arg3: memref<8x128xf32, #tpu.memory_space<vmem>>, %arg4: memref<1x128xf32, #tpu.memory_space<vmem>>, %arg5: memref<128x128xbf16, #tpu.memory_space<vmem>>, %arg6: memref<128x128xbf16, #tpu.memory_space<vmem>>, %arg7: memref<128x128xbf16, #tpu.memory_space<vmem>>, %arg8: memref<128x128xbf16, #tpu.memory_space<vmem>>, %arg9: memref<128x128xbf16, #tpu.memory_space<vmem>>, %arg10: memref<1x128xf32, #tpu.memory_space<vmem>>, %arg11: memref<1x128xf32, #tpu.memory_space<vmem>>, %arg12: memref<1x1xf32, #tpu.memory_space<vmem>>, %arg13: memref<64x1024xbf16, #tpu.memory_space<vmem>>, %arg14: memref<2x1024xf32, #tpu.memory_space<vmem>>, %arg15: memref<2x1xf32, #tpu.memory_space<vmem>>, %arg16: memref<2x64xf32, #tpu.memory_space<vmem>>) attributes {dimension_semantics = [], scalar_prefetch = 0 : i64, scratch_operands = 0 : i64, tpu.core_type = #tpu.core_type<tc>} {
    %c0 = arith.constant 0 : index
    %c0_0 = arith.constant 0 : index
    %0 = vector.load %arg0[%c0, %c0_0] : memref<128x128xf32, #tpu.memory_space<vmem>>, vector<128x128xf32>
    %c0_1 = arith.constant 0 : index
    %c0_2 = arith.constant 0 : index
    %1 = vector.load %arg4[%c0_1, %c0_2] : memref<1x128xf32, #tpu.memory_space<vmem>>, vector<1x128xf32>
    %2 = vector.broadcast %1 : vector<1x128xf32> to vector<128x128xf32>
    %3 = arith.addf %0, %2 : vector<128x128xf32>
    %c0_3 = arith.constant 0 : index
    %c0_4 = arith.constant 0 : index
    %4 = vector.load %arg2[%c0_3, %c0_4] : memref<8x128xf32, #tpu.memory_space<vmem>>, vector<8x128xf32>
    %c0_5 = arith.constant 0 : index
    %c0_6 = arith.constant 0 : index
    %5 = vector.load %arg5[%c0_5, %c0_6] : memref<128x128xbf16, #tpu.memory_space<vmem>>, vector<128x128xbf16>
    %6 = arith.truncf %4 : vector<8x128xf32> to vector<8x128xbf16>
    %cst = arith.constant dense<0.000000e+00> : vector<8x128xf32>
    %7 = tpu.matmul %6, %5, %cst {dimension_numbers = #tpu.dot_dimension_numbers<[1], [0], [0], [1], [0, 0, 1, 1], [], []>} : vector<8x128xbf16>, vector<128x128xbf16>, vector<8x128xf32> -> vector<8x128xf32>
    %c0_7 = arith.constant 0 : index
    %c0_8 = arith.constant 0 : index
    %8 = vector.load %arg1[%c0_7, %c0_8] : memref<128x128xf32, #tpu.memory_space<vmem>>, vector<128x128xf32>
    %9 = arith.addf %3, %8 : vector<128x128xf32>
    %c0_9 = arith.constant 0 : index
    %c0_10 = arith.constant 0 : index
    %10 = vector.load %arg6[%c0_9, %c0_10] : memref<128x128xbf16, #tpu.memory_space<vmem>>, vector<128x128xbf16>
    %11 = arith.truncf %9 : vector<128x128xf32> to vector<128x128xbf16>
    %cst_11 = arith.constant dense<0.000000e+00> : vector<128x128xf32>
    %12 = tpu.matmul %11, %10, %cst_11 {dimension_numbers = #tpu.dot_dimension_numbers<[1], [0], [0], [1], [0, 0, 1, 1], [], []>} : vector<128x128xbf16>, vector<128x128xbf16>, vector<128x128xf32> -> vector<128x128xf32>
    %c0_12 = arith.constant 0 : index
    %c0_13 = arith.constant 0 : index
    %13 = vector.load %arg7[%c0_12, %c0_13] : memref<128x128xbf16, #tpu.memory_space<vmem>>, vector<128x128xbf16>
    %14 = arith.truncf %3 : vector<128x128xf32> to vector<128x128xbf16>
    %cst_14 = arith.constant dense<0.000000e+00> : vector<128x128xf32>
    %15 = tpu.matmul %14, %13, %cst_14 {dimension_numbers = #tpu.dot_dimension_numbers<[1], [0], [0], [1], [0, 0, 1, 1], [], []>} : vector<128x128xbf16>, vector<128x128xbf16>, vector<128x128xf32> -> vector<128x128xf32>
    %16 = arith.truncf %7 : vector<8x128xf32> to vector<8x128xbf16>
    %17 = arith.truncf %12 : vector<128x128xf32> to vector<128x128xbf16>
    %cst_15 = arith.constant dense<0.000000e+00> : vector<8x128xf32>
    %18 = tpu.matmul %16, %17, %cst_15 {dimension_numbers = #tpu.dot_dimension_numbers<[1], [1], [0], [0], [0, 0, 1, 0], [], []>} : vector<8x128xbf16>, vector<128x128xbf16>, vector<8x128xf32> -> vector<8x128xf32>
    %cst_16 = arith.constant 0.0883883461 : f32
    %19 = vector.broadcast %cst_16 : f32 to vector<8x128xf32>
    %20 = arith.mulf %18, %19 : vector<8x128xf32>
    %c0_17 = arith.constant 0 : index
    %c0_18 = arith.constant 0 : index
    %21 = vector.load %arg3[%c0_17, %c0_18] : memref<8x128xf32, #tpu.memory_space<vmem>>, vector<8x128xf32>
    %22 = arith.addf %20, %21 : vector<8x128xf32>
    %cst_19 = arith.constant dense<0xFF800000> : vector<8xf32>
    %23 = vector.multi_reduction <maximumf>, %22, %cst_19 [1] : vector<8x128xf32> to vector<8xf32>
    %24 = vector.shape_cast %23 : vector<8xf32> to vector<8x1xf32>
    %25 = vector.broadcast %24 : vector<8x1xf32> to vector<8x128xf32>
    %26 = arith.subf %22, %25 : vector<8x128xf32>
    %27 = math.exp %26 : vector<8x128xf32>
    %cst_20 = arith.constant dense<0.000000e+00> : vector<8xf32>
    %28 = vector.multi_reduction <add>, %27, %cst_20 [1] : vector<8x128xf32> to vector<8xf32>
    %29 = vector.shape_cast %28 : vector<8xf32> to vector<8x1xf32>
    %30 = tpu.reciprocal %29 {approx = true} : vector<8x1xf32> -> vector<8x1xf32>
    %31 = vector.broadcast %30 : vector<8x1xf32> to vector<8x128xf32>
    %32 = arith.mulf %27, %31 : vector<8x128xf32>
    %33 = arith.truncf %32 : vector<8x128xf32> to vector<8x128xbf16>
    %34 = arith.truncf %15 : vector<128x128xf32> to vector<128x128xbf16>
    %cst_21 = arith.constant dense<0.000000e+00> : vector<8x128xf32>
    %35 = tpu.matmul %33, %34, %cst_21 {dimension_numbers = #tpu.dot_dimension_numbers<[1], [0], [0], [1], [0, 0, 1, 1], [], []>} : vector<8x128xbf16>, vector<128x128xbf16>, vector<8x128xf32> -> vector<8x128xf32>
    %c0_22 = arith.constant 0 : index
    %c0_23 = arith.constant 0 : index
    %36 = vector.load %arg8[%c0_22, %c0_23] : memref<128x128xbf16, #tpu.memory_space<vmem>>, vector<128x128xbf16>
    %37 = arith.truncf %35 : vector<8x128xf32> to vector<8x128xbf16>
    %cst_24 = arith.constant dense<0.000000e+00> : vector<8x128xf32>
    %38 = tpu.matmul %37, %36, %cst_24 {dimension_numbers = #tpu.dot_dimension_numbers<[1], [0], [0], [1], [0, 0, 1, 1], [], []>} : vector<8x128xbf16>, vector<128x128xbf16>, vector<8x128xf32> -> vector<8x128xf32>
    %39 = arith.addf %4, %38 : vector<8x128xf32>
    %40 = vector.extract_strided_slice %39 {offsets = [0, 0], sizes = [1, 128], strides = [1, 1]} : vector<8x128xf32> to vector<1x128xf32>
    %41 = vector.extract_strided_slice %39 {offsets = [4, 0], sizes = [1, 128], strides = [1, 1]} : vector<8x128xf32> to vector<1x128xf32>
    %42 = tpu.concatenate %40, %41 in 0 : vector<1x128xf32>, vector<1x128xf32> -> vector<2x128xf32>
    %43 = vector.extract_strided_slice %39 {offsets = [1, 0], sizes = [1, 128], strides = [1, 1]} : vector<8x128xf32> to vector<1x128xf32>
    %44 = vector.extract_strided_slice %39 {offsets = [5, 0], sizes = [1, 128], strides = [1, 1]} : vector<8x128xf32> to vector<1x128xf32>
    %45 = tpu.concatenate %43, %44 in 0 : vector<1x128xf32>, vector<1x128xf32> -> vector<2x128xf32>
    %c0_25 = arith.constant 0 : index
    %c0_26 = arith.constant 0 : index
    %46 = vector.load %arg11[%c0_25, %c0_26] : memref<1x128xf32, #tpu.memory_space<vmem>>, vector<1x128xf32>
    %47 = vector.broadcast %46 : vector<1x128xf32> to vector<2x128xf32>
    %48 = arith.mulf %42, %47 : vector<2x128xf32>
    %cst_27 = arith.constant dense<0.000000e+00> : vector<2xf32>
    %49 = vector.multi_reduction <add>, %48, %cst_27 [1] : vector<2x128xf32> to vector<2xf32>
    %50 = vector.shape_cast %49 : vector<2xf32> to vector<2x1xf32>
    %c0_28 = arith.constant 0 : index
    %c0_29 = arith.constant 0 : index
    %51 = vector.load %arg12[%c0_28, %c0_29] : memref<1x1xf32, #tpu.memory_space<vmem>>, vector<1x1xf32>
    %52 = vector.broadcast %51 : vector<1x1xf32> to vector<2x1xf32>
    %53 = arith.addf %50, %52 : vector<2x1xf32>
    %c0_30 = arith.constant 0 : index
    %c0_31 = arith.constant 0 : index
    %54 = vector.load %arg15[%c0_30, %c0_31] : memref<2x1xf32, #tpu.memory_space<vmem>>, vector<2x1xf32>
    tpu.vector_store %arg15[%c0_30, %c0_31], %53 {strides = array<i32>} : memref<2x1xf32, #tpu.memory_space<vmem>>, vector<2x1xf32>,
    %c0_32 = arith.constant 0 : index
    %c0_33 = arith.constant 0 : index
    %55 = vector.load %arg9[%c0_32, %c0_33] : memref<128x128xbf16, #tpu.memory_space<vmem>>, vector<128x128xbf16>
    %56 = arith.truncf %45 : vector<2x128xf32> to vector<2x128xbf16>
    %cst_34 = arith.constant dense<0.000000e+00> : vector<2x128xf32>
    %57 = tpu.matmul %56, %55, %cst_34 {dimension_numbers = #tpu.dot_dimension_numbers<[1], [0], [0], [1], [0, 0, 1, 1], [], []>} : vector<2x128xbf16>, vector<128x128xbf16>, vector<2x128xf32> -> vector<2x128xf32>
    %c0_35 = arith.constant 0 : index
    %c0_36 = arith.constant 0 : index
    %58 = vector.load %arg10[%c0_35, %c0_36] : memref<1x128xf32, #tpu.memory_space<vmem>>, vector<1x128xf32>
    %59 = vector.broadcast %58 : vector<1x128xf32> to vector<2x128xf32>
    %60 = arith.addf %57, %59 : vector<2x128xf32>
    %61 = vector.extract_strided_slice %60 {offsets = [0, 0], sizes = [1, 128], strides = [1, 1]} : vector<2x128xf32> to vector<1x128xf32>
    %62 = vector.extract_strided_slice %3 {offsets = [0, 0], sizes = [64, 128], strides = [1, 1]} : vector<128x128xf32> to vector<64x128xf32>
    %63 = arith.truncf %61 : vector<1x128xf32> to vector<1x128xbf16>
    %64 = arith.truncf %62 : vector<64x128xf32> to vector<64x128xbf16>
    %cst_37 = arith.constant dense<0.000000e+00> : vector<1x64xf32>
    %65 = tpu.matmul %63, %64, %cst_37 {dimension_numbers = #tpu.dot_dimension_numbers<[1], [1], [0], [0], [0, 0, 1, 0], [], []>} : vector<1x128xbf16>, vector<64x128xbf16>, vector<1x64xf32> -> vector<1x64xf32>
    %66 = vector.extract_strided_slice %60 {offsets = [1, 0], sizes = [1, 128], strides = [1, 1]} : vector<2x128xf32> to vector<1x128xf32>
    %67 = vector.extract_strided_slice %3 {offsets = [64, 0], sizes = [64, 128], strides = [1, 1]} : vector<128x128xf32> to vector<64x128xf32>
    %68 = arith.truncf %66 : vector<1x128xf32> to vector<1x128xbf16>
    %69 = arith.truncf %67 : vector<64x128xf32> to vector<64x128xbf16>
    %cst_38 = arith.constant dense<0.000000e+00> : vector<1x64xf32>
    %70 = tpu.matmul %68, %69, %cst_38 {dimension_numbers = #tpu.dot_dimension_numbers<[1], [1], [0], [0], [0, 0, 1, 0], [], []>} : vector<1x128xbf16>, vector<64x128xbf16>, vector<1x64xf32> -> vector<1x64xf32>
    %71 = tpu.concatenate %65, %70 in 0 : vector<1x64xf32>, vector<1x64xf32> -> vector<2x64xf32>
    %c0_39 = arith.constant 0 : index
    %c0_40 = arith.constant 0 : index
    %72 = vector.load %arg16[%c0_39, %c0_40] : memref<2x64xf32, #tpu.memory_space<vmem>>, vector<2x64xf32>
    tpu.vector_store %arg16[%c0_39, %c0_40], %71 {strides = array<i32>} : memref<2x64xf32, #tpu.memory_space<vmem>>, vector<2x64xf32>,
    %c0_41 = arith.constant 0 : index
    %c0_42 = arith.constant 0 : index
    %73 = vector.load %arg13[%c0_41, %c0_42] : memref<64x1024xbf16, #tpu.memory_space<vmem>>, vector<64x1024xbf16>
    %74 = arith.truncf %71 : vector<2x64xf32> to vector<2x64xbf16>
    %cst_43 = arith.constant dense<0.000000e+00> : vector<2x1024xf32>
    %75 = tpu.matmul %74, %73, %cst_43 {dimension_numbers = #tpu.dot_dimension_numbers<[1], [0], [0], [1], [0, 0, 1, 1], [], []>} : vector<2x64xbf16>, vector<64x1024xbf16>, vector<2x1024xf32> -> vector<2x1024xf32>
    %c0_44 = arith.constant 0 : index
    %c0_45 = arith.constant 0 : index
    %76 = vector.load %arg14[%c0_44, %c0_45] : memref<2x1024xf32, #tpu.memory_space<vmem>>, vector<2x1024xf32>
    tpu.vector_store %arg14[%c0_44, %c0_45], %75 {strides = array<i32>} : memref<2x1024xf32, #tpu.memory_space<vmem>>, vector<2x1024xf32>,
    return
  }
}

</mosaic_0001>

<bundles_post_ra>
// kernel: model_forward.2
= control target key start
LH: loop header
LB: loop body
LE: loop exit
PB: predicated region body
PF: predicated region fallthrough
CT: control target
= control target key end

     0   :  { %vm82_vm0 = vcmask 392192   ;;  %s2235_s1 = inlined_call_operand.vmem [shape: bf16[48,128], index: 1, kind: input, shape index: {}]   ;;  %s2236_s0 = inlined_call_operand.vmem [shape: f32[128,48], index: 0, kind: input, shape index: {}]   ;;  %s2237_s2 = inlined_call_operand.vmem [shape: f32[1,128], index: 2, kind: input, shape index: {}]   ;;  %s2238_s3 = inlined_call_operand.vmem [shape: bf16[128,256], index: 3, kind: input, shape index: {}]   ;;  %s2239_s5 = inlined_call_operand.vmem [shape: bf16[256,128], index: 5, kind: input, shape index: {}]   ;;  %s2240_s4 = inlined_call_operand.vmem [shape: f32[1,256], index: 4, kind: input, shape index: {}]   ;;  %s2241_s6 = inlined_call_operand.vmem [shape: f32[1,128], index: 6, kind: input, shape index: {}]   ;;  %s2242_s7 = inlined_call_operand.vmem [shape: f32[128,128], index: 7, kind: output, shape index: {}]  }
   0x1   :  { %v1325_v0 = vld [vmem:[%s2235_s1] sm:$0xff]   ;;  %v1326_v1 = vld [vmem:[%s2235_s1 + $0x8] sm:$0xff]   ;;  %v1327_v4 = vld [vmem:[%s2235_s1 + $0x10] sm:$0xff]  }
   0x2   :  { %1302 = vmatprep.subr.bf16.mxu0 %v1325_v0  ;;  %v27_v2 = vld [vmem:[%s2236_s0] sm:$0xff]  ;;  %v28_v3 = vld [vmem:[%s2236_s0 + $0x8] sm:$0xff]  ;;  %v29_v6 = vld [vmem:[%s2236_s0 + $0x10] sm:$0xff] }
   0x3   :  { %1303 = vmatpush3.bf16.msra.mxu0 %v1325_v0  ;;  %v49_v5 = vpack.c.bf16 %v28_v3, %v27_v2  ;;  %v30_v7 = vld [vmem:[%s2236_s0 + $0x18] sm:$0xff]  ;;  %v31_v8 = vld [vmem:[%s2236_s0 + $0x20] sm:$0xff]  ;;  %v32_v9 = vld [vmem:[%s2236_s0 + $0x28] sm:$0xff] }
   0x4   :  { %1304 = vmatprep.subr.bf16.mxu0 %v1326_v1  ;;  %v50_v10 = vpack.c.bf16 %v30_v7, %v29_v6  ;;  %v51_v11 = vpack.c.bf16 %v32_v9, %v31_v8  ;;  %v33_v12 = vld [vmem:[%s2236_s0 + $0x30] sm:$0xff]  ;;  %v34_v13 = vld [vmem:[%s2236_s0 + $0x38] sm:$0xff]  ;;  %v35_v14 = vld [vmem:[%s2236_s0 + $0x40] sm:$0xff] }
   0x5   :  { %1308 = vmatprep.mubr.msk.bf16.mxu0 %vm82_vm0, %v49_v5  ;;  %v36_v15 = vld [vmem:[%s2236_s0 + $0x48] sm:$0xff]  ;;  %v52_v16 = vpack.c.bf16 %v34_v13, %v33_v12  ;;  %v37_v18 = vld [vmem:[%s2236_s0 + $0x50] sm:$0xff]  ;;  %v38_v19 = vld [vmem:[%s2236_s0 + $0x58] sm:$0xff] }
   0x6   :  { %v53_v17 = vpack.c.bf16 %v36_v15, %v35_v14  ;;  %v39_v20 = vld [vmem:[%s2236_s0 + $0x60] sm:$0xff]  ;;  %v40_v21 = vld [vmem:[%s2236_s0 + $0x68] sm:$0xff]  ;;  %v54_v22 = vpack.c.bf16 %v38_v19, %v37_v18  ;;  %v41_v24 = vld [vmem:[%s2236_s0 + $0x70] sm:$0xff] }
   0x7   :  { %1305 = vmatpush3.bf16.msra.mxu0 %v1326_v1  ;;  %v55_v23 = vpack.c.bf16 %v40_v21, %v39_v20  ;;  %v42_v25 = vld [vmem:[%s2236_s0 + $0x78] sm:$0xff]  ;;  %v1182_v27 = vld [vmem:[%s2237_s2] ss:$0 sm:$0xff]  ;;  %v1328_v60 = vld [vmem:[%s2238_s3 + $0x4] ss:$8 sps:$4 sm:$0xff]  }
   0x8   :  { %1306 = vmatprep.subr.bf16.mxu0 %v1327_v4  ;;  %v56_v26 = vpack.c.bf16 %v42_v25, %v41_v24  ;;  %v1330_v61 = vld [vmem:[%s2238_s3] ss:$8 sps:$4 sm:$0xff]   ;;  %497 = vmatprep.subr.bf16.mxu1 %v1328_v60  ;;  %v1331_v62 = vld [vmem:[%s2238_s3 + $0x14] ss:$8 sps:$4 sm:$0xff]   ;;  %v1333_v63 = vld [vmem:[%s2238_s3 + $0x10] ss:$8 sps:$4 sm:$0xff]  }
   0x9   :  { %498 = vmatpush1.bf16.msra.mxu1 %v1330_v61  ;;  %v1334_v0 = vld [vmem:[%s2238_s3 + $0x24] ss:$8 sps:$4 sm:$0xff]   ;;  %v1337_v60 = vld [vmem:[%s2238_s3 + $0x34] ss:$8 sps:$4 sm:$0xff]  }
   0xa   :  { %499 = vmatprep.subr.bf16.mxu1 %v1331_v62 }
   0xb   :  { %1307 = vmatpush3.bf16.msra.mxu0 %v1327_v4 }
   0xd   :  { %500 = vmatpush1.bf16.msra.mxu1 %v1333_v63 }
   0xe   :  { %1309 = vmatmul.mubr.msk.bf16.vlgmr.msra.gmra.mrb[0].mxu0 %vm82_vm0, %v50_v10  ;;  %501 = vmatprep.subr.bf16.mxu1 %v1334_v0  ;;  %v1339_v0 = vld [vmem:[%s2238_s3 + $0x30] ss:$8 sps:$4 sm:$0xff]  }
   0xf   :  { %1312 = vmatprep.mubr.msk.bf16.mxu0 %vm82_vm0, %v51_v11 }
  0x16   :  { %1313 = vmatmul.mubr.msk.bf16.gmra.mrb[4].mxu0 %vm82_vm0, %v52_v16 }
  0x17   :  { %1316 = vmatprep.mubr.msk.bf16.mxu0 %vm82_vm0, %v53_v17 }
  0x1e   :  { %1317 = vmatmul.mubr.msk.bf16.gmra.mrb[8].mxu0 %vm82_vm0, %v54_v22 }
  0x1f   :  { %1320 = vmatprep.mubr.msk.bf16.mxu0 %vm82_vm0, %v55_v23 }
  0x26   :  { %1321 = vmatmul.mubr.msk.bf16.gmra.mrb[12].mxu0 %vm82_vm0, %v56_v26 }
  0xe1   :  { %v1310_v28 = vpop.f32.mrb[0].mxu0 }
  0xe2   :  { %v1573_v29 = vadd.f32 %v1310_v28, %v1182_v27  ;;  %v141_v30 = vpop.f32.mrb[1].mxu0 }
  0xe3   :  { %v1575_v31 = vadd.f32 %v1182_v27, %v141_v30  ;;  %v1311_v32 = vpop.f32.mrb[2].mxu0 }
  0xe4   :  { %208 = vadd.xlane.f32.xlu1 %v1573_v29  ;;  %v144_v33 = vpop.f32.mrb[3].mxu0  ;;  %v1579_v34 = vadd.f32 %v1311_v32, %v1182_v27 }
  0xe5   :  { %204 = vadd.xlane.f32.xlu0 %v1575_v31  ;;  %v1581_v35 = vadd.f32 %v1182_v27, %v144_v33 }
  0xe8   :  { %210 = vadd.xlane.f32.xlu1 %v1579_v34 }
  0xe9   :  { %v1314_v36 = vpop.f32.mrb[4].mxu0  ;;  %206 = vadd.xlane.f32.xlu0 %v1581_v35 }
  0xea   :  { %v157_v37 = vpop.f32.mrb[5].mxu0  ;;  %v1587_v41 = vadd.f32 %v1314_v36, %v1182_v27 }
  0xeb   :  { %v1585_v38 = vadd.f32 %v1182_v27, %v157_v37  ;;  %v1315_v39 = vpop.f32.mrb[6].mxu0 }
  0xec   :  { %v160_v40 = vpop.f32.mrb[7].mxu0  ;;  %v1592_v43 = vadd.f32 %v1315_v39, %v1182_v27 }
  0xed   :  { %v1589_v42 = vadd.f32 %v1182_v27, %v160_v40  ;;  %212 = vadd.xlane.f32.xlu0 %v1585_v38 }
  0xef   :  { %214 = vadd.xlane.f32.xlu1 %v1589_v42 }
  0xf1   :  { %v1318_v44 = vpop.f32.mrb[8].mxu0  ;;  %216 = vadd.xlane.f32.xlu0 %v1587_v41 }
  0xf2   :  { %v173_v45 = vpop.f32.mrb[9].mxu0  ;;  %v1599_v49 = vadd.f32 %v1318_v44, %v1182_v27 }
  0xf3   :  { %v1596_v46 = vadd.f32 %v1182_v27, %v173_v45  ;;  %v1319_v47 = vpop.f32.mrb[10].mxu0  ;;  %218 = vadd.xlane.f32.xlu1 %v1592_v43  ;;  %v1336_v45 = vld [vmem:[%s2238_s3 + $0x20] ss:$8 sps:$4 sm:$0xff]  }
  0xf4   :  { %v176_v48 = vpop.f32.mrb[11].mxu0  ;;  %2250 = vst [vmem:[#allocation2_spill] sm:$0xff] %v1599_v49  ;;  %v1604_v51 = vadd.f32 %v1319_v47, %v1182_v27  ;;  %502 = vmatpush1.bf16.msra.mxu1 %v1336_v45  ;;  %v1464_v45 = vmov 0  }
  0xf5   :  { %v1601_v50 = vadd.f32 %v1182_v27, %v176_v48  ;;  %220 = vadd.xlane.f32.xlu0 %v1596_v46  ;;  %503 = vmatprep.subr.bf16.mxu1 %v1337_v60 }
  0xf6   :  { %2252 = vst [vmem:[#allocation4_spill] sm:$0xff] %v1604_v51  ;;  %529 = vmatprep.mubr.bf16.mxu1 %v1464_v45 }
  0xf7   :  { %2251 = vst [vmem:[#allocation3_spill] sm:$0xff] %v1601_v50  ;;  %222 = vadd.xlane.f32.xlu1 %v1601_v50 }
  0xf8   :  { %504 = vmatpush1.bf16.msra.mxu1 %v1339_v0 }
  0xf9   :  { %v1322_v52 = vpop.f32.mrb[12].mxu0  ;;  %224 = vadd.xlane.f32.xlu0 %v1599_v49 }
  0xfa   :  { %v189_v53 = vpop.f32.mrb[13].mxu0  ;;  %v1611_v57 = vadd.f32 %v1322_v52, %v1182_v27 }
  0xfb   :  { %v1608_v54 = vadd.f32 %v1182_v27, %v189_v53  ;;  %v1323_v55 = vpop.f32.mrb[14].mxu0  ;;  %226 = vadd.xlane.f32.xlu1 %v1604_v51 }
  0xfc   :  { %v192_v56 = vpop.f32.mrb[15].mxu0  ;;  %2254 = vst [vmem:[#allocation6_spill] sm:$0xff] %v1611_v57  ;;  %v1616_v59 = vadd.f32 %v1323_v55, %v1182_v27 }
  0xfd   :  { %2253 = vst [vmem:[#allocation5_spill] sm:$0xff] %v1608_v54  ;;  %v1613_v58 = vadd.f32 %v1182_v27, %v192_v56  ;;  %228 = vadd.xlane.f32.xlu0 %v1608_v54 }
  0xfe   :  { %2256 = vst [vmem:[#allocation8_spill] sm:$0xff] %v1616_v59 }
  0xff   :  { %2255 = vst [vmem:[#allocation7_spill] sm:$0xff] %v1613_v58  ;;  %230 = vadd.xlane.f32.xlu1 %v1613_v58 }
 0x101   :  { %232 = vadd.xlane.f32.xlu0 %v1611_v57 }
 0x103   :  { %234 = vadd.xlane.f32.xlu1 %v1616_v59 }
 0x171   :  { %v209_v1 = vpop.xlane.xlu1 %208 }
 0x172   :  { %v205_v2 = vpop.xlane.xlu0 %204  ;;  %v239_v3 = vmul.f32 0.0078125, %v209_v1 }
 0x173   :  { %v237_v4 = vmul.f32 0.0078125, %v205_v2 }
 0x174   :  { %v1640_v8 = vsub.f32 %v1573_v29, %v239_v3 }
 0x175   :  { %v1637_v5 = vsub.f32 %v1575_v31, %v237_v4  ;;  %v211_v6 = vpop.xlane.xlu1 %210 }
 0x176   :  { %v207_v7 = vpop.xlane.xlu0 %206  ;;  %v240_v9 = vmul.f32 0.0078125, %v211_v6  ;;  %v271_v16 = vmul.f32 %v1640_v8, %v1640_v8 }
 0x177   :  { %v238_v10 = vmul.f32 0.0078125, %v207_v7  ;;  %v269_v11 = vmul.f32 %v1637_v5, %v1637_v5 }
 0x178   :  { %v1648_v14 = vsub.f32 %v1579_v34, %v240_v9 }
 0x179   :  { %v1645_v12 = vsub.f32 %v1581_v35, %v238_v10  ;;  %285 = vadd.xlane.f32.xlu0 %v269_v11  ;;  %v1340_v10 = vld [vmem:[%s2238_s3 + $0x44] ss:$8 sps:$4 sm:$0xff]  }
 0x17a   :  { %v213_v13 = vpop.xlane.xlu0 %212  ;;  %v272_v24 = vmul.f32 %v1648_v14, %v1648_v14  ;;  %505 = vmatprep.subr.bf16.mxu1 %v1340_v10 }
 0x17b   :  { %v241_v15 = vmul.f32 0.0078125, %v213_v13  ;;  %v270_v17 = vmul.f32 %v1645_v12, %v1645_v12  ;;  %v1342_v13 = vld [vmem:[%s2238_s3 + $0x40] ss:$8 sps:$4 sm:$0xff]  }
 0x17c   :  { %v215_v18 = vpop.xlane.xlu1 %214  ;;  %506 = vmatpush1.bf16.msra.mxu1 %v1342_v13 }
 0x17d   :  { %v1655_v19 = vsub.f32 %v1585_v38, %v241_v15  ;;  %v242_v20 = vmul.f32 0.0078125, %v215_v18  ;;  %289 = vadd.xlane.f32.xlu0 %v271_v16  ;;  %287 = vadd.xlane.f32.xlu1 %v270_v17 }
 0x17e   :  { %v217_v21 = vpop.xlane.xlu0 %216 }
 0x17f   :  { %v1658_v22 = vsub.f32 %v1589_v42, %v242_v20  ;;  %v243_v23 = vmul.f32 0.0078125, %v217_v21  ;;  %v273_v25 = vmul.f32 %v1655_v19, %v1655_v19 }
 0x180   :  { %v219_v26 = vpop.xlane.xlu1 %218 }
 0x181   :  { %v1665_v27 = vsub.f32 %v1587_v41, %v243_v23  ;;  %v244_v28 = vmul.f32 0.0078125, %v219_v26  ;;  %291 = vadd.xlane.f32.xlu1 %v272_v24  ;;  %293 = vadd.xlane.f32.xlu0 %v273_v25  ;;  %v274_v36 = vmul.f32 %v1658_v22, %v1658_v22  ;;  %v1343_v24 = vld [vmem:[%s2238_s3 + $0x54] ss:$8 sps:$4 sm:$0xff]   ;;  %v1345_v25 = vld [vmem:[%s2238_s3 + $0x50] ss:$8 sps:$4 sm:$0xff]  }
 0x182   :  { %v221_v30 = vpop.xlane.xlu0 %220  ;;  %507 = vmatprep.subr.bf16.mxu1 %v1343_v24 }
 0x183   :  { %v1668_v32 = vsub.f32 %v1592_v43, %v244_v28  ;;  %v245_v33 = vmul.f32 0.0078125, %v221_v30  ;;  %v275_v37 = vmul.f32 %v1665_v27, %v1665_v27  ;;  %508 = vmatpush1.bf16.msra.mxu1 %v1345_v25 }
 0x184   :  { %v223_v39 = vpop.xlane.xlu1 %222 }
 0x185   :  { %v1675_v40 = vsub.f32 %v1596_v46, %v245_v33  ;;  %v246_v44 = vmul.f32 0.0078125, %v223_v39  ;;  %295 = vadd.xlane.f32.xlu1 %v274_v36  ;;  %297 = vadd.xlane.f32.xlu0 %v275_v37  ;;  %v276_v53 = vmul.f32 %v1668_v32, %v1668_v32  ;;  %v1346_v33 = vld [vmem:[%s2238_s3 + $0x64] ss:$8 sps:$4 sm:$0xff]   ;;  %v1348_v36 = vld [vmem:[%s2238_s3 + $0x60] ss:$8 sps:$4 sm:$0xff]  }
 0x186   :  { %v225_v47 = vpop.xlane.xlu0 %224  ;;  %509 = vmatprep.subr.bf16.mxu1 %v1346_v33  ;;  %v1349_v39 = vld [vmem:[%s2238_s3 + $0x74] ss:$8 sps:$4 sm:$0xff]  }
 0x187   :  { %v1681_v48 = vsub.f32 %v1601_v50, %v246_v44  ;;  %v247_v52 = vmul.f32 0.0078125, %v225_v47  ;;  %v277_v55 = vmul.f32 %v1675_v40, %v1675_v40  ;;  %510 = vmatpush1.bf16.msra.mxu1 %v1348_v36  ;;  %v1351_v44 = vld [vmem:[%s2238_s3 + $0x70] ss:$8 sps:$4 sm:$0xff]  }
 0x188   :  { %v227_v56 = vpop.xlane.xlu1 %226  ;;  %511 = vmatprep.subr.bf16.mxu1 %v1349_v39 }
 0x189   :  { %v1691_v61 = vsub.f32 %v1599_v49, %v247_v52  ;;  %v248_v62 = vmul.f32 0.0078125, %v227_v56  ;;  %299 = vadd.xlane.f32.xlu1 %v276_v53  ;;  %301 = vadd.xlane.f32.xlu0 %v277_v55  ;;  %v278_v3 = vmul.f32 %v1681_v48, %v1681_v48 }
 0x18a   :  { %v229_v63 = vpop.xlane.xlu0 %228 }
 0x18b   :  { %v1697_v1 = vsub.f32 %v1604_v51, %v248_v62  ;;  %v249_v2 = vmul.f32 0.0078125, %v229_v63  ;;  %v279_v4 = vmul.f32 %v1691_v61, %v1691_v61  ;;  %512 = vmatpush1.bf16.msra.mxu1 %v1351_v44 }
 0x18c   :  { %v231_v6 = vpop.xlane.xlu1 %230 }
 0x18d   :  { %v1704_v7 = vsub.f32 %v1608_v54, %v249_v2  ;;  %v250_v9 = vmul.f32 0.0078125, %v231_v6  ;;  %303 = vadd.xlane.f32.xlu1 %v278_v3  ;;  %305 = vadd.xlane.f32.xlu0 %v279_v4  ;;  %v280_v17 = vmul.f32 %v1697_v1, %v1697_v1 }
 0x18e   :  { %v233_v11 = vpop.xlane.xlu0 %232 }
 0x18f   :  { %v1713_v15 = vsub.f32 %v1613_v58, %v250_v9  ;;  %v251_v16 = vmul.f32 0.0078125, %v233_v11  ;;  %v281_v18 = vmul.f32 %v1704_v7, %v1704_v7 }
 0x190   :  { %v235_v20 = vpop.xlane.xlu1 %234 }
 0x191   :  { %v1720_v21 = vsub.f32 %v1611_v57, %v251_v16  ;;  %v252_v23 = vmul.f32 0.0078125, %v235_v20  ;;  %307 = vadd.xlane.f32.xlu1 %v280_v17  ;;  %309 = vadd.xlane.f32.xlu0 %v281_v18  ;;  %v282_v28 = vmul.f32 %v1713_v15, %v1713_v15 }
 0x193   :  { %v1729_v26 = vsub.f32 %v1616_v59, %v252_v23  ;;  %v283_v30 = vmul.f32 %v1720_v21, %v1720_v21 }
 0x195   :  { %311 = vadd.xlane.f32.xlu1 %v282_v28  ;;  %313 = vadd.xlane.f32.xlu0 %v283_v30  ;;  %v284_v37 = vmul.f32 %v1729_v26, %v1729_v26 }
 0x199   :  { %315 = vadd.xlane.f32.xlu1 %v284_v37 }
 0x206   :  { %v286_v47 = vpop.xlane.xlu0 %285 }
 0x207   :  { %v317_v52 = vmul.f32 0.0078125, %v286_v47 }
 0x209   :  { %v333_v53 = vadd.f32 1e-06, %v317_v52 }
 0x20a   :  { %v288_v55 = vpop.xlane.xlu1 %287  ;;  %v290_v56 = vpop.xlane.xlu0 %289 }
 0x20b   :  { %v318_v60 = vmul.f32 0.0078125, %v288_v55  ;;  %1368 = vrsqrt.f32 %v333_v53  ;;  %v319_v63 = vmul.f32 0.0078125, %v290_v56 }
 0x20d   :  { %v334_v62 = vadd.f32 1e-06, %v318_v60  ;;  %v335_v3 = vadd.f32 1e-06, %v319_v63 }
 0x20e   :  { %v292_v0 = vpop.xlane.xlu1 %291  ;;  %v294_v6 = vpop.xlane.xlu0 %293 }
 0x20f   :  { %1370 = vrsqrt.f32 %v334_v62  ;;  %v320_v2 = vmul.f32 0.0078125, %v292_v0  ;;  %v321_v11 = vmul.f32 0.0078125, %v294_v6 }
 0x211   :  { %v336_v4 = vadd.f32 1e-06, %v320_v2  ;;  %v337_v20 = vadd.f32 1e-06, %v321_v11 }
 0x212   :  { %v296_v9 = vpop.xlane.xlu1 %295  ;;  %v298_v23 = vpop.xlane.xlu0 %297 }
 0x213   :  { %1372 = vrsqrt.f32 %v336_v4  ;;  %v322_v10 = vmul.f32 0.0078125, %v296_v9  ;;  %v323_v36 = vmul.f32 0.0078125, %v298_v23 }
 0x214   :  { %1374 = vrsqrt.f32 %v335_v3 }
 0x215   :  { %v1369_v13 = vpop.eup %1368  ;;  %v338_v16 = vadd.f32 1e-06, %v322_v10  ;;  %v339_v52 = vadd.f32 1e-06, %v323_v36 }
 0x216   :  { %v300_v17 = vpop.xlane.xlu1 %299  ;;  %v365_v24 = vmul.f32 %v1369_v13, %v1637_v5  ;;  %v302_v53 = vpop.xlane.xlu0 %301 }
 0x217   :  { %1376 = vrsqrt.f32 %v338_v16  ;;  %v324_v28 = vmul.f32 0.0078125, %v300_v17  ;;  %v325_v60 = vmul.f32 0.0078125, %v302_v53 }
 0x218   :  { %1378 = vrsqrt.f32 %v337_v20 }
 0x219   :  { %v1371_v18 = vpop.eup %1370  ;;  %v340_v39 = vadd.f32 1e-06, %v324_v28  ;;  %v341_v3 = vadd.f32 1e-06, %v325_v60 }
 0x21a   :  { %v366_v25 = vmul.f32 %v1371_v18, %v1645_v12  ;;  %v304_v44 = vpop.xlane.xlu1 %303 }
 0x21b   :  { %1380 = vrsqrt.f32 %v340_v39  ;;  %v326_v12 = vmul.f32 0.0078125, %v304_v44 }
 0x21c   :  { %v397_v30 = vpack.c.bf16 %v366_v25, %v365_v24  ;;  %1382 = vrsqrt.f32 %v339_v52 }
 0x21d   :  { %v1373_v33 = vpop.eup %1372  ;;  %v342_v63 = vadd.f32 1e-06, %v326_v12 }
 0x21e   :  { %530 = vmatmul.mubr.bf16.vlgmr.msra.gmra.mrb[0].mxu1 %v397_v30  ;;  %v1375_v37 = vpop.eup %1374  ;;  %v368_v47 = vmul.f32 %v1373_v33, %v1648_v14  ;;  %v308_v0 = vpop.xlane.xlu1 %307 }
 0x21f   :  { %539 = vmatprep.mubr.bf16.mxu1 %v1464_v45  ;;  %v367_v5 = vmul.f32 %v1375_v37, %v1640_v8  ;;  %v306_v14 = vpop.xlane.xlu0 %305  ;;  %1384 = vrsqrt.f32 %v342_v63  ;;  %v328_v8 = vmul.f32 0.0078125, %v308_v0 }
 0x220   :  { %1386 = vrsqrt.f32 %v341_v3  ;;  %v327_v10 = vmul.f32 0.0078125, %v306_v14 }
 0x221   :  { %v398_v55 = vpack.c.bf16 %v368_v47, %v367_v5  ;;  %v1377_v56 = vpop.eup %1376  ;;  %v344_v13 = vadd.f32 1e-06, %v328_v8  ;;  %v1358_v8 = vld [vmem:[%s2239_s5 + $0x58] sm:$0xff]  }
 0x222   :  { %v1379_v62 = vpop.eup %1378  ;;  %v370_v2 = vmul.f32 %v1377_v56, %v1658_v22  ;;  %v312_v16 = vpop.xlane.xlu1 %311  ;;  %v343_v18 = vadd.f32 1e-06, %v327_v10  ;;  %v1361_v10 = vld [vmem:[%s2239_s5 + $0x20] sm:$0xff]  }
 0x223   :  { %v369_v4 = vmul.f32 %v1379_v62, %v1655_v19  ;;  %v310_v22 = vpop.xlane.xlu0 %309  ;;  %1388 = vrsqrt.f32 %v344_v13  ;;  %v330_v19 = vmul.f32 0.0078125, %v312_v16  ;;  %v1363_v13 = vld [vmem:[%s2239_s5 + $0x28] sm:$0xff]   ;;  %v1364_v16 = vld [vmem:[%s2239_s5 + $0x70] sm:$0xff]  }
 0x224   :  { %1390 = vrsqrt.f32 %v343_v18  ;;  %v329_v25 = vmul.f32 0.0078125, %v310_v22  ;;  %v1366_v18 = vld [vmem:[%s2239_s5 + $0x78] sm:$0xff]  }
 0x225   :  { %v399_v6 = vpack.c.bf16 %v370_v2, %v369_v4  ;;  %v1381_v9 = vpop.eup %1380  ;;  %v346_v30 = vadd.f32 1e-06, %v330_v19  ;;  %v1352_v4 = vld [vmem:[%s2239_s5 + $0x40] sm:$0xff]   ;;  %v1367_v22 = vld [vmem:[%s2239_s5 + $0x38] sm:$0xff]  }
 0x226   :  { %540 = vmatmul.mubr.bf16.gmra.mrb[4].mxu1 %v398_v55  ;;  %v1383_v11 = vpop.eup %1382  ;;  %v372_v17 = vmul.f32 %v1381_v9, %v1668_v32  ;;  %v316_v33 = vpop.xlane.xlu1 %315  ;;  %v345_v37 = vadd.f32 1e-06, %v329_v25  ;;  %1238 = vmatprep.subr.bf16.mxu0 %v1352_v4  ;;  %v1360_v9 = vld [vmem:[%s2239_s5 + $0x60] sm:$0xff]  }
 0x227   :  { %549 = vmatprep.mubr.bf16.mxu1 %v1464_v45  ;;  %v371_v20 = vmul.f32 %v1383_v11, %v1665_v27  ;;  %v314_v32 = vpop.xlane.xlu0 %313  ;;  %1392 = vrsqrt.f32 %v346_v30  ;;  %v332_v27 = vmul.f32 0.0078125, %v316_v33  ;;  %v1362_v11 = vld [vmem:[%s2239_s5 + $0x68] sm:$0xff]  }
 0x228   :  { %1394 = vrsqrt.f32 %v345_v37  ;;  %v331_v52 = vmul.f32 0.0078125, %v314_v32 }
 0x229   :  { %v400_v23 = vpack.c.bf16 %v372_v17, %v371_v20  ;;  %v1385_v24 = vpop.eup %1384  ;;  %v348_v5 = vadd.f32 1e-06, %v332_v27  ;;  %v1365_v17 = vld [vmem:[%s2239_s5 + $0x30] sm:$0xff]   ;;  %v407_v20 = vlaneseq }
 0x22a   :  { %v1387_v28 = vpop.eup %1386  ;;  %v374_v36 = vmul.f32 %v1385_v24, %v1681_v48  ;;  %v347_v55 = vadd.f32 1e-06, %v331_v52  ;;  %v405_v24 = vld [vmem:[%s2240_s4] sm:$0x3] }
 0x22b   :  { %v373_v39 = vmul.f32 %v1387_v28, %v1675_v40  ;;  %1396 = vrsqrt.f32 %v348_v5  ;;  %v408_v19 = vshrl.u32 %v407_v20, 7 }
 0x22c   :  { %1398 = vrsqrt.f32 %v347_v55 }
 0x22d   :  { %v401_v44 = vpack.c.bf16 %v374_v36, %v373_v39  ;;  %v1389_v47 = vpop.eup %1388  ;;  %v413_v25 = vsub.s32 1, %v408_v19 }
 0x22e   :  { %550 = vmatmul.mubr.bf16.gmra.mrb[8].mxu1 %v399_v6  ;;  %v1391_v53 = vpop.eup %1390  ;;  %v376_v12 = vmul.f32 %v1389_v47, %v1697_v1  ;;  %v1359_v6 = vld [vmem:[%s2239_s5 + $0x18] sm:$0xff]  }
 0x22f   :  { %559 = vmatprep.mubr.bf16.mxu1 %v1464_v45  ;;  %v375_v48 = vmul.f32 %v1391_v53, %v1691_v61  ;;  %v1826_v30 = vrot.slane %v405_v24, %v413_v25 }
 0x231   :  { %v402_v56 = vpack.c.bf16 %v376_v12, %v375_v48  ;;  %v1393_v60 = vpop.eup %1392 }
 0x232   :  { %v1395_v40 = vpop.eup %1394  ;;  %v378_v62 = vmul.f32 %v1393_v60, %v1713_v15  ;;  %v1354_v15 = vld [vmem:[%s2239_s5 + $0x48] sm:$0xff]  }
 0x233   :  { %v377_v63 = vmul.f32 %v1395_v40, %v1704_v7  ;;  %v1353_v7 = vld [vmem:[%s2239_s5] sm:$0xff]  }
 0x234   :  { %1239 = vmatpush3.bf16.msra.mxu0 %v1353_v7 }
 0x235   :  { %v403_v0 = vpack.c.bf16 %v378_v62, %v377_v63  ;;  %v1397_v2 = vpop.eup %1396  ;;  %1240 = vmatprep.subr.bf16.mxu0 %v1354_v15 }
 0x236   :  { %560 = vmatmul.mubr.bf16.gmra.mrb[12].mxu1 %v400_v23  ;;  %v1399_v3 = vpop.eup %1398  ;;  %v380_v61 = vmul.f32 %v1397_v2, %v1729_v26  ;;  %v1356_v26 = vld [vmem:[%s2239_s5 + $0x50] sm:$0xff]   ;;  %v409_v23 = vsub.s32 0, %v408_v19 }
 0x237   :  { %569 = vmatprep.mubr.bf16.mxu1 %v1464_v45  ;;  %v379_v1 = vmul.f32 %v1399_v3, %v1720_v21  ;;  %v1355_v21 = vld [vmem:[%s2239_s5 + $0x8] sm:$0xff]  }
 0x238   :  { %1241 = vmatpush3.bf16.msra.mxu0 %v1355_v21  ;;  %v1824_v28 = vrot.slane %v405_v24, %v409_v23 }
 0x239   :  { %v404_v14 = vpack.c.bf16 %v380_v61, %v379_v1  ;;  %1242 = vmatprep.subr.bf16.mxu0 %v1356_v26 }
 0x23e   :  { %570 = vmatmul.mubr.bf16.gmra.mrb[16].mxu1 %v401_v44 }
 0x23f   :  { %579 = vmatprep.mubr.bf16.mxu1 %v1464_v45 }
 0x246   :  { %580 = vmatmul.mubr.bf16.gmra.mrb[20].mxu1 %v402_v56 }
 0x247   :  { %589 = vmatprep.mubr.bf16.mxu1 %v1464_v45 }
 0x24e   :  { %590 = vmatmul.mubr.bf16.gmra.mrb[24].mxu1 %v403_v0 }
 0x24f   :  { %599 = vmatprep.mubr.bf16.mxu1 %v1464_v45  ;;  %v1357_v45 = vld [vmem:[%s2239_s5 + $0x10] sm:$0xff]  }
 0x250   :  { %1243 = vmatpush3.bf16.msra.mxu0 %v1357_v45 }
 0x251   :  { %1244 = vmatprep.subr.bf16.mxu0 %v1358_v8 }
 0x254   :  { %1245 = vmatpush3.bf16.msra.mxu0 %v1359_v6 }
 0x255   :  { %1246 = vmatprep.subr.bf16.mxu0 %v1360_v9 }
 0x256   :  { %600 = vmatmul.mubr.bf16.gmra.mrb[28].mxu1 %v404_v14 }
 0x258   :  { %1247 = vmatpush3.bf16.msra.mxu0 %v1361_v10 }
 0x259   :  { %1248 = vmatprep.subr.bf16.mxu0 %v1362_v11 }
 0x25c   :  { %1249 = vmatpush3.bf16.msra.mxu0 %v1363_v13 }
 0x25d   :  { %1250 = vmatprep.subr.bf16.mxu0 %v1364_v16 }
 0x260   :  { %1251 = vmatpush3.bf16.msra.mxu0 %v1365_v17 }
 0x261   :  { %1252 = vmatprep.subr.bf16.mxu0 %v1366_v18 }
 0x264   :  { %1253 = vmatpush3.bf16.msra.mxu0 %v1367_v22 }
 0x2f1   :  { %v531_v33 = vpop.f32.mrb[0].mxu1 }
 0x2f2   :  { %v1829_v36 = vadd.f32 %v531_v33, %v1824_v28  ;;  %v533_v37 = vpop.f32.mrb[1].mxu1 }
 0x2f3   :  { %v1832_v32 = vadd.f32 %v533_v37, %v1826_v30  ;;  %v535_v39 = vpop.f32.mrb[2].mxu1 }
 0x2f4   :  { %v610_v27 = vmul.f32 %v1829_v36, %v1829_v36  ;;  %v1837_v44 = vadd.f32 %v535_v39, %v1824_v28  ;;  %v537_v47 = vpop.f32.mrb[3].mxu1 }
 0x2f5   :  { %v611_v52 = vmul.f32 %v1832_v32, %v1832_v32  ;;  %v1842_v53 = vadd.f32 %v537_v47, %v1826_v30 }
 0x2f6   :  { %v642_v5 = vmul.f32 %v610_v27, %v1829_v36  ;;  %v612_v12 = vmul.f32 %v1837_v44, %v1837_v44 }
 0x2f7   :  { %v643_v55 = vmul.f32 %v611_v52, %v1832_v32  ;;  %v613_v48 = vmul.f32 %v1842_v53, %v1842_v53 }
 0x2f8   :  { %v674_v56 = vmul.f32 0.044715, %v642_v5  ;;  %v644_v60 = vmul.f32 %v612_v12, %v1837_v44 }
 0x2f9   :  { %v675_v40 = vmul.f32 0.044715, %v643_v55  ;;  %v645_v62 = vmul.f32 %v613_v48, %v1842_v53  ;;  %v541_v63 = vpop.f32.mrb[4].mxu1 }
 0x2fa   :  { %v706_v0 = vadd.f32 %v674_v56, %v1829_v36  ;;  %v676_v2 = vmul.f32 0.044715, %v644_v60  ;;  %v1854_v3 = vadd.f32 %v541_v63, %v1824_v28  ;;  %v543_v61 = vpop.f32.mrb[5].mxu1 }
 0x2fb   :  { %v707_v1 = vadd.f32 %v675_v40, %v1832_v32  ;;  %v677_v14 = vmul.f32 0.044715, %v645_v62  ;;  %v1858_v4 = vadd.f32 %v543_v61, %v1826_v30  ;;  %v545_v7 = vpop.f32.mrb[6].mxu1 }
 0x2fc   :  { %v738_v15 = vmul.f32 0.7978846, %v706_v0  ;;  %v708_v21 = vadd.f32 %v676_v2, %v1837_v44  ;;  %v614_v26 = vmul.f32 %v1854_v3, %v1854_v3  ;;  %v1864_v45 = vadd.f32 %v545_v7, %v1824_v28  ;;  %v547_v8 = vpop.f32.mrb[7].mxu1 }
 0x2fd   :  { %v739_v6 = vmul.f32 0.7978846, %v707_v1  ;;  %v709_v9 = vadd.f32 %v677_v14, %v1842_v53  ;;  %v615_v10 = vmul.f32 %v1858_v4, %v1858_v4  ;;  %v1870_v11 = vadd.f32 %v547_v8, %v1826_v30 }
 0x2fe   :  { %1400 = vtanh.f32 %v738_v15  ;;  %v740_v13 = vmul.f32 0.7978846, %v708_v21  ;;  %v646_v16 = vmul.f32 %v614_v26, %v1854_v3  ;;  %v616_v17 = vmul.f32 %v1864_v45, %v1864_v45 }
 0x2ff   :  { %1402 = vtanh.f32 %v739_v6  ;;  %v741_v18 = vmul.f32 0.7978846, %v709_v9  ;;  %v647_v22 = vmul.f32 %v615_v10, %v1858_v4  ;;  %v617_v20 = vmul.f32 %v1870_v11, %v1870_v11 }
 0x300   :  { %1404 = vtanh.f32 %v740_v13  ;;  %v678_v19 = vmul.f32 0.044715, %v646_v16  ;;  %v648_v23 = vmul.f32 %v616_v17, %v1864_v45 }
 0x301   :  { %v679_v24 = vmul.f32 0.044715, %v647_v22  ;;  %v649_v25 = vmul.f32 %v617_v20, %v1870_v11  ;;  %v551_v33 = vpop.f32.mrb[8].mxu1  ;;  %1406 = vtanh.f32 %v741_v18 }
 0x302   :  { %v710_v37 = vadd.f32 %v678_v19, %v1854_v3  ;;  %v680_v39 = vmul.f32 0.044715, %v648_v23  ;;  %v1882_v27 = vadd.f32 %v551_v33, %v1824_v28  ;;  %v553_v47 = vpop.f32.mrb[9].mxu1 }
 0x303   :  { %v711_v52 = vadd.f32 %v679_v24, %v1858_v4  ;;  %v681_v5 = vmul.f32 0.044715, %v649_v25  ;;  %v1886_v12 = vadd.f32 %v553_v47, %v1826_v30  ;;  %v555_v55 = vpop.f32.mrb[10].mxu1 }
 0x304   :  { %v742_v48 = vmul.f32 0.7978846, %v710_v37  ;;  %v712_v56 = vadd.f32 %v680_v39, %v1864_v45  ;;  %v618_v60 = vmul.f32 %v1882_v27, %v1882_v27  ;;  %v1892_v40 = vadd.f32 %v555_v55, %v1824_v28  ;;  %v557_v62 = vpop.f32.mrb[11].mxu1 }
 0x305   :  { %v743_v63 = vmul.f32 0.7978846, %v711_v52  ;;  %v713_v0 = vadd.f32 %v681_v5, %v1870_v11  ;;  %v619_v2 = vmul.f32 %v1886_v12, %v1886_v12  ;;  %v1898_v61 = vadd.f32 %v557_v62, %v1826_v30 }
 0x306   :  { %1408 = vtanh.f32 %v742_v48  ;;  %v744_v1 = vmul.f32 0.7978846, %v712_v56  ;;  %v650_v14 = vmul.f32 %v618_v60, %v1882_v27  ;;  %v620_v7 = vmul.f32 %v1892_v40, %v1892_v40 }
 0x307   :  { %1410 = vtanh.f32 %v743_v63  ;;  %v745_v15 = vmul.f32 0.7978846, %v713_v0  ;;  %v651_v21 = vmul.f32 %v619_v2, %v1886_v12  ;;  %v621_v26 = vmul.f32 %v1898_v61, %v1898_v61 }
 0x308   :  { %v1401_v8 = vpop.eup %1400  ;;  %1412 = vtanh.f32 %v744_v1  ;;  %v682_v6 = vmul.f32 0.044715, %v650_v14  ;;  %v652_v9 = vmul.f32 %v620_v7, %v1892_v40 }
 0x309   :  { %v1403_v10 = vpop.eup %1402  ;;  %v802_v13 = vadd.f32 1.0, %v1401_v8  ;;  %1414 = vtanh.f32 %v745_v15  ;;  %v683_v16 = vmul.f32 0.044715, %v651_v21  ;;  %v653_v17 = vmul.f32 %v621_v26, %v1898_v61  ;;  %v561_v18 = vpop.f32.mrb[12].mxu1 }
 0x30a   :  { %v1405_v22 = vpop.eup %1404  ;;  %v714_v20 = vadd.f32 %v682_v6, %v1882_v27  ;;  %v684_v19 = vmul.f32 0.044715, %v652_v9  ;;  %v1910_v23 = vadd.f32 %v561_v18, %v1824_v28  ;;  %v563_v24 = vpop.f32.mrb[13].mxu1  ;;  %v803_v25 = vadd.f32 1.0, %v1403_v10 }
 0x30b   :  { %v834_v33 = vmul.f32 0.5, %v802_v13  ;;  %v804_v37 = vadd.f32 1.0, %v1405_v22  ;;  %v715_v39 = vadd.f32 %v683_v16, %v1886_v12  ;;  %v685_v47 = vmul.f32 0.044715, %v653_v17  ;;  %v565_v52 = vpop.f32.mrb[14].mxu1  ;;  %v1407_v62 = vpop.eup %1406 }
 0x30c   :  { %v746_v5 = vmul.f32 0.7978846, %v714_v20  ;;  %v716_v55 = vadd.f32 %v684_v19, %v1892_v40  ;;  %v622_v48 = vmul.f32 %v1910_v23, %v1910_v23  ;;  %v1917_v56 = vadd.f32 %v563_v24, %v1826_v30  ;;  %v567_v60 = vpop.f32.mrb[15].mxu1 }
 0x30d   :  { %v1920_v63 = vmul.f32 %v834_v33, %v1829_v36  ;;  %v836_v0 = vmul.f32 0.5, %v804_v37  ;;  %v747_v2 = vmul.f32 0.7978846, %v715_v39  ;;  %v717_v1 = vadd.f32 %v685_v47, %v1898_v61 }
 0x30e   :  { %1416 = vtanh.f32 %v746_v5  ;;  %v748_v14 = vmul.f32 0.7978846, %v716_v55  ;;  %v654_v7 = vmul.f32 %v622_v48, %v1910_v23  ;;  %v623_v15 = vmul.f32 %v1917_v56, %v1917_v56 }
 0x30f   :  { %v1927_v21 = vmul.f32 %v836_v0, %v1837_v44  ;;  %1418 = vtanh.f32 %v747_v2  ;;  %v749_v26 = vmul.f32 0.7978846, %v717_v1  ;;  %v1930_v8 = vadd.f32 %v565_v52, %v1824_v28 }
 0x310   :  { %v1932_v36 = vpop.eup %1408  ;;  %1420 = vtanh.f32 %v748_v14  ;;  %v686_v6 = vmul.f32 0.044715, %v654_v7  ;;  %v655_v9 = vmul.f32 %v623_v15, %v1917_v56  ;;  %v1936_v10 = vadd.f32 %v567_v60, %v1826_v30 }
 0x311   :  { %v1938_v13 = vpop.eup %1410  ;;  %1422 = vtanh.f32 %v749_v26  ;;  %v624_v16 = vmul.f32 %v1930_v8, %v1930_v8  ;;  %v571_v17 = vpop.f32.mrb[16].mxu1  ;;  %v805_v18 = vadd.f32 1.0, %v1407_v62  ;;  %v835_v55 = vmul.f32 0.5, %v803_v25 }
 0x312   :  { %v1944_v22 = vpop.eup %1412  ;;  %v718_v20 = vadd.f32 %v686_v6, %v1910_v23  ;;  %v687_v19 = vmul.f32 0.044715, %v655_v9  ;;  %v625_v24 = vmul.f32 %v1936_v10, %v1936_v10  ;;  %v1950_v33 = vadd.f32 %v571_v17, %v1824_v28  ;;  %v573_v37 = vpop.f32.mrb[17].mxu1 }
 0x313   :  { %v1952_v39 = vpop.eup %1414  ;;  %v656_v47 = vmul.f32 %v624_v16, %v1930_v8  ;;  %v1956_v52 = vadd.f32 %v573_v37, %v1826_v30  ;;  %v575_v5 = vpop.f32.mrb[18].mxu1  ;;  %v837_v48 = vmul.f32 0.5, %v805_v18 }
 0x314   :  { %v750_v60 = vmul.f32 0.7978846, %v718_v20  ;;  %v719_v62 = vadd.f32 %v687_v19, %v1917_v56  ;;  %v657_v0 = vmul.f32 %v625_v24, %v1936_v10  ;;  %v626_v2 = vmul.f32 %v1950_v33, %v1950_v33  ;;  %v577_v1 = vpop.f32.mrb[19].mxu1 }
 0x315   :  { %v688_v14 = vmul.f32 0.044715, %v656_v47  ;;  %v627_v7 = vmul.f32 %v1956_v52, %v1956_v52  ;;  %v1965_v15 = vadd.f32 %v575_v5, %v1824_v28  ;;  %v1968_v26 = vadd.f32 %v577_v1, %v1826_v30 }
 0x316   :  { %1424 = vtanh.f32 %v750_v60  ;;  %v751_v25 = vmul.f32 0.7978846, %v719_v62  ;;  %v689_v6 = vmul.f32 0.044715, %v657_v0  ;;  %v658_v9 = vmul.f32 %v626_v2, %v1950_v33 }
 0x317   :  { %v720_v16 = vadd.f32 %v688_v14, %v1930_v8  ;;  %v659_v17 = vmul.f32 %v627_v7, %v1956_v52  ;;  %v628_v18 = vmul.f32 %v1965_v15, %v1965_v15  ;;  %v629_v20 = vmul.f32 %v1968_v26, %v1968_v26 }
 0x318   :  { %v1977_v19 = vpop.eup %1416  ;;  %1426 = vtanh.f32 %v751_v25  ;;  %v721_v24 = vadd.f32 %v689_v6, %v1936_v10  ;;  %v690_v37 = vmul.f32 0.044715, %v658_v9  ;;  %v867_v47 = vmul.f32 %v835_v55, %v1832_v32 }
 0x319   :  { %v1981_v5 = vpop.eup %1418  ;;  %v752_v60 = vmul.f32 0.7978846, %v720_v16  ;;  %v691_v62 = vmul.f32 0.044715, %v659_v17  ;;  %v660_v0 = vmul.f32 %v628_v18, %v1965_v15  ;;  %v661_v2 = vmul.f32 %v629_v20, %v1968_v26  ;;  %v581_v1 = vpop.f32.mrb[20].mxu1 }
 0x31a   :  { %v1985_v14 = vpop.eup %1420  ;;  %v753_v7 = vmul.f32 0.7978846, %v721_v24  ;;  %v722_v44 = vadd.f32 %v690_v37, %v1950_v33  ;;  %v869_v25 = vmul.f32 %v837_v48, %v1842_v53  ;;  %v1990_v6 = vadd.f32 %v581_v1, %v1824_v28  ;;  %v583_v32 = vpop.f32.mrb[21].mxu1 }
 0x31b   :  { %v1992_v55 = vpop.eup %1422  ;;  %1428 = vtanh.f32 %v752_v60  ;;  %v723_v9 = vadd.f32 %v691_v62, %v1956_v52  ;;  %v692_v16 = vmul.f32 0.044715, %v660_v0  ;;  %v693_v17 = vmul.f32 0.044715, %v661_v2  ;;  %v585_v18 = vpop.f32.mrb[22].mxu1 }
 0x31c   :  { %1430 = vtanh.f32 %v753_v7  ;;  %v754_v20 = vmul.f32 0.7978846, %v722_v44  ;;  %v931_v59 = vpack.c.bf16 %v869_v25, %v867_v47  ;;  %v630_v24 = vmul.f32 %v1990_v6, %v1990_v6  ;;  %v587_v37 = vpop.f32.mrb[23].mxu1 }
 0x31d   :  { %v755_v53 = vmul.f32 0.7978846, %v723_v9  ;;  %v724_v48 = vadd.f32 %v692_v16, %v1965_v15  ;;  %v725_v1 = vadd.f32 %v693_v17, %v1968_v26  ;;  %v2000_v57 = vadd.f32 %v583_v32, %v1826_v30 }
 0x31e   :  { %1432 = vtanh.f32 %v754_v20  ;;  %1081 = vmatprep.mubr.bf16.mxu0 %v931_v59  ;;  %v662_v60 = vmul.f32 %v630_v24, %v1990_v6  ;;  %v2004_v62 = vadd.f32 %v585_v18, %v1824_v28  ;;  %v2007_v44 = vadd.f32 %v587_v37, %v1826_v30 }
 0x31f   :  { %1434 = vtanh.f32 %v755_v53  ;;  %v756_v47 = vmul.f32 0.7978846, %v724_v48  ;;  %v757_v0 = vmul.f32 0.7978846, %v725_v1  ;;  %v2257_v2 = vpack.c.bf16 %v1927_v21, %v1920_v63 }
 0x320   :  { %v631_v7 = vmul.f32 %v2000_v57, %v2000_v57  ;;  %v2014_v25 = vpop.eup %1424  ;;  %v694_v59 = vmul.f32 0.044715, %v662_v60  ;;  %v632_v32 = vmul.f32 %v2004_v62, %v2004_v62  ;;  %v633_v9 = vmul.f32 %v2007_v44, %v2007_v44 }
 0x321   :  { %1082 = vmatmul.mubr.bf16.vlgmr.msra.gmra.mrb[16].mxu0 %v2257_v2  ;;  %v807_v16 = vadd.f32 1.0, %v1938_v13  ;;  %1436 = vtanh.f32 %v756_v47  ;;  %v809_v63 = vadd.f32 1.0, %v1952_v39  ;;  %v806_v21 = vadd.f32 1.0, %v1932_v36  ;;  %v591_v18 = vpop.f32.mrb[24].mxu1 }
 0x322   :  { %v663_v17 = vmul.f32 %v631_v7, %v2000_v57  ;;  %v2024_v20 = vpop.eup %1426  ;;  %1438 = vtanh.f32 %v757_v0  ;;  %v726_v24 = vadd.f32 %v694_v59, %v1990_v6  ;;  %v664_v37 = vmul.f32 %v632_v32, %v2004_v62  ;;  %v593_v48 = vpop.f32.mrb[25].mxu1 }
 0x323   :  { %v665_v53 = vmul.f32 %v633_v9, %v2007_v44  ;;  %v839_v13 = vmul.f32 0.5, %v807_v16  ;;  %v841_v60 = vmul.f32 0.5, %v809_v63  ;;  %v808_v47 = vadd.f32 1.0, %v1944_v22  ;;  %v595_v2 = vpop.f32.mrb[26].mxu1 }
 0x324   :  { %v695_v1 = vmul.f32 0.044715, %v663_v17  ;;  %v758_v39 = vmul.f32 0.7978846, %v726_v24  ;;  %v696_v7 = vmul.f32 0.044715, %v664_v37  ;;  %v2031_v58 = vadd.f32 %v591_v18, %v1824_v28 }
 0x325   :  { %v697_v36 = vmul.f32 0.044715, %v665_v53  ;;  %v2033_v0 = vpop.eup %1428  ;;  %v871_v32 = vmul.f32 %v839_v13, %v1858_v4  ;;  %v873_v9 = vmul.f32 %v841_v60, %v1870_v11  ;;  %v838_v17 = vmul.f32 0.5, %v806_v21  ;;  %v597_v16 = vpop.f32.mrb[27].mxu1 }
 0x326   :  { %v727_v59 = vadd.f32 %v695_v1, %v2000_v57  ;;  %v2038_v63 = vpop.eup %1430  ;;  %1440 = vtanh.f32 %v758_v39  ;;  %v728_v22 = vadd.f32 %v696_v7, %v2004_v62  ;;  %v840_v37 = vmul.f32 0.5, %v808_v47 }
 0x327   :  { %v729_v24 = vadd.f32 %v697_v36, %v2007_v44  ;;  %v933_v53 = vpack.c.bf16 %v873_v9, %v871_v32  ;;  %v870_v54 = vmul.f32 %v838_v17, %v1854_v3  ;;  %v634_v1 = vmul.f32 %v2031_v58, %v2031_v58 }
 0x328   :  { %v759_v18 = vmul.f32 0.7978846, %v727_v59  ;;  %v2045_v4 = vpop.eup %1432  ;;  %v760_v11 = vmul.f32 0.7978846, %v728_v22  ;;  %v872_v13 = vmul.f32 %v840_v37, %v1864_v45  ;;  %v2049_v60 = vadd.f32 %v593_v48, %v1826_v30 }
 0x329   :  { %v761_v21 = vmul.f32 0.7978846, %v729_v24  ;;  %v2051_v39 = vpop.eup %1434  ;;  %1089 = vmatprep.mubr.bf16.mxu0 %v933_v53  ;;  %v666_v47 = vmul.f32 %v634_v1, %v2031_v58  ;;  %v2055_v3 = vadd.f32 %v595_v2, %v1824_v28  ;;  %v2058_v7 = vadd.f32 %v597_v16, %v1826_v30  ;;  %v601_v36 = vpop.f32.mrb[28].mxu1 }
 0x32a   :  { %1442 = vtanh.f32 %v759_v18  ;;  %v932_v59 = vpack.c.bf16 %v872_v13, %v870_v54  ;;  %v635_v45 = vmul.f32 %v2049_v60, %v2049_v60  ;;  %v811_v48 = vadd.f32 1.0, %v1981_v5  ;;  %v603_v32 = vpop.f32.mrb[29].mxu1 }
 0x32b   :  { %1444 = vtanh.f32 %v760_v11  ;;  %v2063_v9 = vpop.eup %1436  ;;  %v698_v17 = vmul.f32 0.044715, %v666_v47  ;;  %v636_v2 = vmul.f32 %v2055_v3, %v2055_v3  ;;  %v637_v16 = vmul.f32 %v2058_v7, %v2058_v7  ;;  %v605_v22 = vpop.f32.mrb[30].mxu1 }
 0x32c   :  { %1446 = vtanh.f32 %v761_v21  ;;  %v2069_v24 = vpop.eup %1438  ;;  %1090 = vmatmul.mubr.bf16.gmra.mrb[20].mxu0 %v932_v59  ;;  %v667_v54 = vmul.f32 %v635_v45, %v2049_v60  ;;  %v813_v37 = vadd.f32 1.0, %v1992_v55  ;;  %v843_v5 = vmul.f32 0.5, %v811_v48  ;;  %v607_v53 = vpop.f32.mrb[31].mxu1 }
 0x32d   :  { %v810_v18 = vadd.f32 1.0, %v1977_v19  ;;  %v730_v1 = vadd.f32 %v698_v17, %v2031_v58  ;;  %v668_v11 = vmul.f32 %v636_v2, %v2055_v3  ;;  %v669_v21 = vmul.f32 %v637_v16, %v2058_v7 }
 0x32e   :  { %v812_v13 = vadd.f32 1.0, %v1985_v14  ;;  %v699_v47 = vmul.f32 0.044715, %v667_v54  ;;  %v845_v51 = vmul.f32 0.5, %v813_v37  ;;  %v875_v59 = vmul.f32 %v843_v5, %v1886_v12 }
 0x32f   :  { %v842_v49 = vmul.f32 0.5, %v810_v18  ;;  %v762_v45 = vmul.f32 0.7978846, %v730_v1  ;;  %v700_v50 = vmul.f32 0.044715, %v668_v11  ;;  %v2080_v48 = vadd.f32 %v601_v36, %v1824_v28 }
 0x330   :  { %v701_v55 = vmul.f32 0.044715, %v669_v21  ;;  %v2082_v19 = vpop.eup %1440  ;;  %v731_v17 = vadd.f32 %v699_v47, %v2049_v60  ;;  %v877_v2 = vmul.f32 %v845_v51, %v1898_v61  ;;  %v844_v16 = vmul.f32 0.5, %v812_v13 }
 0x331   :  { %v874_v14 = vmul.f32 %v842_v49, %v1882_v27  ;;  %1448 = vtanh.f32 %v762_v45  ;;  %v732_v54 = vadd.f32 %v700_v50, %v2055_v3  ;;  %v638_v37 = vmul.f32 %v2080_v48, %v2080_v48 }
 0x332   :  { %v733_v12 = vadd.f32 %v701_v55, %v2058_v7  ;;  %v763_v5 = vmul.f32 0.7978846, %v731_v17  ;;  %v935_v36 = vpack.c.bf16 %v877_v2, %v875_v59  ;;  %v876_v18 = vmul.f32 %v844_v16, %v1892_v40 }
 0x333   :  { %v2093_v1 = vadd.f32 %v603_v32, %v1826_v30  ;;  %v764_v51 = vmul.f32 0.7978846, %v732_v54  ;;  %v670_v49 = vmul.f32 %v638_v37, %v2080_v48  ;;  %v2099_v50 = vadd.f32 %v605_v22, %v1824_v28 }
 0x334   :  { %v2095_v11 = vpop.eup %1442  ;;  %v765_v61 = vmul.f32 0.7978846, %v733_v12  ;;  %1450 = vtanh.f32 %v763_v5  ;;  %1097 = vmatprep.mubr.bf16.mxu0 %v935_v36  ;;  %v934_v21 = vpack.c.bf16 %v876_v18, %v874_v14  ;;  %v2106_v32 = vadd.f32 %v607_v53, %v1826_v30 }
 0x335   :  { %v2101_v27 = vpop.eup %1444  ;;  %v639_v40 = vmul.f32 %v2093_v1, %v2093_v1  ;;  %1452 = vtanh.f32 %v764_v51  ;;  %v702_v47 = vmul.f32 0.044715, %v670_v49  ;;  %v640_v59 = vmul.f32 %v2099_v50, %v2099_v50 }
 0x336   :  { %v1447_v13 = vpop.eup %1446  ;;  %v815_v28 = vadd.f32 1.0, %v2024_v20  ;;  %1454 = vtanh.f32 %v765_v61  ;;  %1098 = vmatmul.mubr.bf16.gmra.mrb[24].mxu0 %v934_v21  ;;  %v641_v45 = vmul.f32 %v2106_v32, %v2106_v32  ;;  %v817_v55 = vadd.f32 1.0, %v2038_v63 }
 0x337   :  { %v671_v22 = vmul.f32 %v639_v40, %v2093_v1  ;;  %v734_v30 = vadd.f32 %v702_v47, %v2080_v48  ;;  %v672_v53 = vmul.f32 %v640_v59, %v2099_v50  ;;  %v814_v2 = vadd.f32 1.0, %v2014_v25 }
 0x338   :  { %v847_v17 = vmul.f32 0.5, %v815_v28  ;;  %v673_v14 = vmul.f32 %v641_v45, %v2106_v32  ;;  %v849_v20 = vmul.f32 0.5, %v817_v55  ;;  %v816_v54 = vadd.f32 1.0, %v2033_v0 }
 0x339   :  { %v703_v16 = vmul.f32 0.044715, %v671_v22  ;;  %v766_v12 = vmul.f32 0.7978846, %v734_v30  ;;  %v704_v37 = vmul.f32 0.044715, %v672_v53 }
 0x33a   :  { %v879_v5 = vmul.f32 %v847_v17, %v1917_v56  ;;  %v846_v36 = vmul.f32 0.5, %v814_v2  ;;  %v705_v18 = vmul.f32 0.044715, %v673_v14  ;;  %v881_v51 = vmul.f32 %v849_v20, %v1936_v10 }
 0x33b   :  { %v735_v63 = vadd.f32 %v703_v16, %v2093_v1  ;;  %v848_v61 = vmul.f32 0.5, %v816_v54  ;;  %v1449_v49 = vpop.eup %1448  ;;  %1456 = vtanh.f32 %v766_v12  ;;  %v736_v25 = vadd.f32 %v704_v37, %v2099_v50 }
 0x33c   :  { %v878_v21 = vmul.f32 %v846_v36, %v1910_v23  ;;  %v819_v40 = vadd.f32 1.0, %v2051_v39  ;;  %v737_v47 = vadd.f32 %v705_v18, %v2106_v32  ;;  %v937_v59 = vpack.c.bf16 %v881_v51, %v879_v5 }
 0x33d   :  { %v767_v0 = vmul.f32 0.7978846, %v735_v63  ;;  %v880_v56 = vmul.f32 %v848_v61, %v1930_v8  ;;  %v768_v28 = vmul.f32 0.7978846, %v736_v25  ;;  %v821_v22 = vadd.f32 1.0, %v2069_v24 }
 0x33e   :  { %v851_v45 = vmul.f32 0.5, %v819_v40  ;;  %v818_v10 = vadd.f32 1.0, %v2045_v4  ;;  %v1451_v55 = vpop.eup %1450  ;;  %v769_v30 = vmul.f32 0.7978846, %v737_v47  ;;  %1105 = vmatprep.mubr.bf16.mxu0 %v937_v59  ;;  %v820_v23 = vadd.f32 1.0, %v2063_v9 }
 0x33f   :  { %1458 = vtanh.f32 %v767_v0  ;;  %v936_v53 = vpack.c.bf16 %v880_v56, %v878_v21  ;;  %v1453_v39 = vpop.eup %1452  ;;  %v853_v17 = vmul.f32 0.5, %v821_v22  ;;  %v823_v14 = vadd.f32 1.0, %v2095_v11 }
 0x340   :  { %1460 = vtanh.f32 %v768_v28  ;;  %v883_v2 = vmul.f32 %v851_v45, %v1956_v52  ;;  %v850_v16 = vmul.f32 0.5, %v818_v10  ;;  %v1455_v8 = vpop.eup %1454  ;;  %v852_v24 = vmul.f32 0.5, %v820_v23 }
 0x341   :  { %1462 = vtanh.f32 %v769_v30  ;;  %1106 = vmatmul.mubr.bf16.gmra.mrb[28].mxu0 %v936_v53  ;;  %v825_v4 = vadd.f32 1.0, %v1447_v13  ;;  %v885_v20 = vmul.f32 %v853_v17, %v1968_v26  ;;  %v822_v12 = vadd.f32 1.0, %v2082_v19 }
 0x342   :  { %v882_v54 = vmul.f32 %v850_v16, %v1950_v33  ;;  %v824_v9 = vadd.f32 1.0, %v2101_v27  ;;  %v884_v37 = vmul.f32 %v852_v24, %v1965_v15  ;;  %v855_v5 = vmul.f32 0.5, %v823_v14 }
 0x343   :  { %v857_v52 = vmul.f32 0.5, %v825_v4  ;;  %v827_v36 = vadd.f32 1.0, %v1451_v55  ;;  %v939_v63 = vpack.c.bf16 %v885_v20, %v883_v2  ;;  %v854_v18 = vmul.f32 0.5, %v822_v12  ;;  %v2153_v4 = vld [vmem:[%s2241_s6] ss:$0 sm:$0xff] }
 0x344   :  { %v856_v51 = vmul.f32 0.5, %v824_v9  ;;  %v829_v61 = vadd.f32 1.0, %v1455_v8  ;;  %v938_v25 = vpack.c.bf16 %v884_v37, %v882_v54  ;;  %v887_v11 = vmul.f32 %v855_v5, %v2000_v57 }
 0x345   :  { %v889_v26 = vmul.f32 %v857_v52, %v2007_v44  ;;  %v859_v13 = vmul.f32 0.5, %v827_v36  ;;  %v1457_v33 = vpop.eup %1456  ;;  %1113 = vmatprep.mubr.bf16.mxu0 %v939_v63  ;;  %v886_v19 = vmul.f32 %v854_v18, %v1990_v6  ;;  %v826_v21 = vadd.f32 1.0, %v1449_v49 }
 0x346   :  { %v888_v27 = vmul.f32 %v856_v51, %v2004_v62  ;;  %v861_v15 = vmul.f32 0.5, %v829_v61  ;;  %v828_v0 = vadd.f32 1.0, %v1453_v39  ;;  %v830_v47 = vadd.f32 1.0, %v1457_v33 }
 0x347   :  { %v941_v40 = vpack.c.bf16 %v889_v26, %v887_v11  ;;  %v891_v56 = vmul.f32 %v859_v13, %v2049_v60  ;;  %v858_v57 = vmul.f32 0.5, %v826_v21 }
 0x348   :  { %v940_v59 = vpack.c.bf16 %v888_v27, %v886_v19  ;;  %v893_v28 = vmul.f32 %v861_v15, %v2058_v7  ;;  %v860_v44 = vmul.f32 0.5, %v828_v0  ;;  %v862_v53 = vmul.f32 0.5, %v830_v47 }
 0x349   :  { %v1459_v22 = vpop.eup %1458  ;;  %1114 = vmatmul.mubr.bf16.gmra.mrb[32].mxu0 %v938_v25  ;;  %v890_v62 = vmul.f32 %v858_v57, %v2031_v58 }
 0x34a   :  { %v1461_v45 = vpop.eup %1460  ;;  %1121 = vmatprep.mubr.bf16.mxu0 %v941_v40  ;;  %v943_v10 = vpack.c.bf16 %v893_v28, %v891_v56  ;;  %v831_v6 = vadd.f32 1.0, %v1459_v22  ;;  %v892_v49 = vmul.f32 %v860_v44, %v2055_v3  ;;  %v894_v2 = vmul.f32 %v862_v53, %v2080_v48 }
 0x34b   :  { %v1463_v55 = vpop.eup %1462  ;;  %v832_v30 = vadd.f32 1.0, %v1461_v45 }
 0x34c   :  { %v833_v23 = vadd.f32 1.0, %v1463_v55  ;;  %v863_v39 = vmul.f32 0.5, %v831_v6  ;;  %v942_v60 = vpack.c.bf16 %v892_v49, %v890_v62 }
 0x34d   :  { %v864_v17 = vmul.f32 0.5, %v832_v30 }
 0x34e   :  { %v865_v7 = vmul.f32 0.5, %v833_v23  ;;  %v895_v8 = vmul.f32 %v863_v39, %v2093_v1 }
 0x34f   :  { %v896_v16 = vmul.f32 %v864_v17, %v2099_v50 }
 0x350   :  { %v897_v24 = vmul.f32 %v865_v7, %v2106_v32 }
 0x351   :  { %1122 = vmatmul.mubr.bf16.gmra.mrb[36].mxu0 %v940_v59  ;;  %v944_v14 = vpack.c.bf16 %v896_v16, %v894_v2  ;;  %v2259_v16 = vld [vmem:[#allocation2_spill] sm:$0xff] }
 0x352   :  { %1129 = vmatprep.mubr.bf16.mxu0 %v943_v10  ;;  %v945_v58 = vpack.c.bf16 %v897_v24, %v895_v8 }
 0x359   :  { %1130 = vmatmul.mubr.bf16.gmra.mrb[40].mxu0 %v942_v60 }
 0x35a   :  { %1137 = vmatprep.mubr.bf16.mxu0 %v945_v58 }
 0x361   :  { %1138 = vmatmul.mubr.bf16.gmra.mrb[44].mxu0 %v944_v14  ;;  %v2260_v14 = vld [vmem:[#allocation4_spill] sm:$0xff] }
 0x3f4   :  { %v1254_v3 = vpop.f32.mrb[16].mxu0 }
 0x3f5   :  { %v1255_v48 = vpop.f32.mrb[17].mxu0 }
 0x3f6   :  { %v1256_v20 = vadd.f32 %v1255_v48, %v1254_v3  ;;  %v1257_v50 = vpop.f32.mrb[18].mxu0 }
 0x3f7   :  { %v1258_v54 = vpop.f32.mrb[19].mxu0 }
 0x3f8   :  { %v1084_v1 = vadd.f32 %v1256_v20, %v2153_v4  ;;  %v1259_v32 = vadd.f32 %v1258_v54, %v1257_v50 }
 0x3fa   :  { %v1146_v12 = vadd.f32 %v1084_v1, %v1575_v31  ;;  %v1087_v9 = vadd.f32 %v1259_v32, %v2153_v4 }
 0x3fc   :  { %1162 = vst [vmem:[%s2242_s7] sm:$0xff] %v1146_v12  ;;  %v1147_v37 = vadd.f32 %v1087_v9, %v1581_v35  ;;  %v2261_v12 = vld [vmem:[#allocation5_spill] sm:$0xff] }
 0x3fe   :  { %1163 = vst [vmem:[%s2242_s7 + $0x8] sm:$0xff] %v1147_v37 }
 0x3ff   :  { %v1260_v5 = vpop.f32.mrb[20].mxu0 }
 0x400   :  { %v1261_v52 = vpop.f32.mrb[21].mxu0 }
 0x401   :  { %v1262_v36 = vadd.f32 %v1261_v52, %v1260_v5  ;;  %v1263_v63 = vpop.f32.mrb[22].mxu0  ;;  %v2262_v5 = vld [vmem:[#allocation7_spill] sm:$0xff] }
 0x402   :  { %v1264_v18 = vpop.f32.mrb[23].mxu0 }
 0x403   :  { %v1092_v51 = vadd.f32 %v1262_v36, %v2153_v4  ;;  %v1265_v31 = vadd.f32 %v1264_v18, %v1263_v63 }
 0x405   :  { %v1148_v61 = vadd.f32 %v1092_v51, %v1573_v29  ;;  %v1095_v25 = vadd.f32 %v1265_v31, %v2153_v4 }
 0x407   :  { %1164 = vst [vmem:[%s2242_s7 + $0x10] sm:$0xff] %v1148_v61  ;;  %v1149_v35 = vadd.f32 %v1095_v25, %v1579_v34 }
 0x409   :  { %1165 = vst [vmem:[%s2242_s7 + $0x18] sm:$0xff] %v1149_v35  ;;  %v1266_v11 = vpop.f32.mrb[24].mxu0  ;;  %v2263_v35 = vld [vmem:[#allocation6_spill] sm:$0xff] }
 0x40a   :  { %v1267_v26 = vpop.f32.mrb[25].mxu0 }
 0x40b   :  { %v1268_v13 = vadd.f32 %v1267_v26, %v1266_v11  ;;  %v1269_v33 = vpop.f32.mrb[26].mxu0 }
 0x40c   :  { %v1270_v19 = vpop.f32.mrb[27].mxu0 }
 0x40d   :  { %v1100_v27 = vadd.f32 %v1268_v13, %v2153_v4  ;;  %v1271_v29 = vadd.f32 %v1270_v19, %v1269_v33  ;;  %v2264_v13 = vld [vmem:[#allocation8_spill] sm:$0xff] }
 0x40f   :  { %v1150_v15 = vadd.f32 %v1100_v27, %v1585_v38  ;;  %v1103_v21 = vadd.f32 %v1271_v29, %v2153_v4 }
 0x411   :  { %1166 = vst [vmem:[%s2242_s7 + $0x20] sm:$0xff] %v1150_v15  ;;  %v1151_v34 = vadd.f32 %v1103_v21, %v1589_v42 }
 0x413   :  { %1167 = vst [vmem:[%s2242_s7 + $0x28] sm:$0xff] %v1151_v34 }
 0x414   :  { %v1272_v40 = vpop.f32.mrb[28].mxu0 }
 0x415   :  { %v1273_v0 = vpop.f32.mrb[29].mxu0 }
 0x416   :  { %v1274_v47 = vadd.f32 %v1273_v0, %v1272_v40  ;;  %v1275_v59 = vpop.f32.mrb[30].mxu0 }
 0x417   :  { %v1276_v56 = vpop.f32.mrb[31].mxu0 }
 0x418   :  { %v1108_v28 = vadd.f32 %v1274_v47, %v2153_v4  ;;  %v1277_v38 = vadd.f32 %v1276_v56, %v1275_v59 }
 0x41a   :  { %v1152_v57 = vadd.f32 %v1108_v28, %v1587_v41  ;;  %v1111_v22 = vadd.f32 %v1277_v38, %v2153_v4 }
 0x41c   :  { %1168 = vst [vmem:[%s2242_s7 + $0x30] sm:$0xff] %v1152_v57  ;;  %v1153_v42 = vadd.f32 %v1111_v22, %v1592_v43  ;;  %v1278_v44 = vpop.f32.mrb[32].mxu0  ;;  %v2258_v43 = vld [vmem:[#allocation3_spill] sm:$0xff] }
 0x41d   :  { %v1279_v45 = vpop.f32.mrb[33].mxu0 }
 0x41e   :  { %1169 = vst [vmem:[%s2242_s7 + $0x38] sm:$0xff] %v1153_v42  ;;  %v1280_v10 = vadd.f32 %v1279_v45, %v1278_v44  ;;  %v1281_v6 = vpop.f32.mrb[34].mxu0 }
 0x41f   :  { %v1282_v55 = vpop.f32.mrb[35].mxu0 }
 0x420   :  { %v1116_v62 = vadd.f32 %v1280_v10, %v2153_v4  ;;  %v1283_v41 = vadd.f32 %v1282_v55, %v1281_v6 }
 0x422   :  { %v1154_v49 = vadd.f32 %v1116_v62, %v1596_v46  ;;  %v1119_v30 = vadd.f32 %v1283_v41, %v2153_v4 }
 0x424   :  { %1170 = vst [vmem:[%s2242_s7 + $0x40] sm:$0xff] %v1154_v49  ;;  %v1155_v53 = vadd.f32 %v1119_v30, %v2258_v43  ;;  %v1284_v23 = vpop.f32.mrb[36].mxu0 }
 0x425   :  { %v1285_v39 = vpop.f32.mrb[37].mxu0 }
 0x426   :  { %1171 = vst [vmem:[%s2242_s7 + $0x48] sm:$0xff] %v1155_v53  ;;  %v1286_v60 = vadd.f32 %v1285_v39, %v1284_v23  ;;  %v1287_v17 = vpop.f32.mrb[38].mxu0 }
 0x427   :  { %v1288_v7 = vpop.f32.mrb[39].mxu0 }
 0x428   :  { %v1124_v2 = vadd.f32 %v1286_v60, %v2153_v4  ;;  %v1289_v46 = vadd.f32 %v1288_v7, %v1287_v17 }
 0x42a   :  { %v1156_v8 = vadd.f32 %v1124_v2, %v2259_v16  ;;  %v1127_v24 = vadd.f32 %v1289_v46, %v2153_v4 }
 0x42c   :  { %1172 = vst [vmem:[%s2242_s7 + $0x50] sm:$0xff] %v1156_v8  ;;  %v1157_v58 = vadd.f32 %v1127_v24, %v2260_v14  ;;  %v1290_v3 = vpop.f32.mrb[40].mxu0 }
 0x42d   :  { %v1291_v48 = vpop.f32.mrb[41].mxu0 }
 0x42e   :  { %1173 = vst [vmem:[%s2242_s7 + $0x58] sm:$0xff] %v1157_v58  ;;  %v1292_v20 = vadd.f32 %v1291_v48, %v1290_v3  ;;  %v1293_v50 = vpop.f32.mrb[42].mxu0 }
 0x42f   :  { %v1294_v54 = vpop.f32.mrb[43].mxu0 }
 0x430   :  { %v1132_v1 = vadd.f32 %v1292_v20, %v2153_v4  ;;  %v1295_v32 = vadd.f32 %v1294_v54, %v1293_v50 }
 0x432   :  { %v1158_v9 = vadd.f32 %v1132_v1, %v2261_v12  ;;  %v1135_v37 = vadd.f32 %v1295_v32, %v2153_v4 }
 0x434   :  { %1174 = vst [vmem:[%s2242_s7 + $0x60] sm:$0xff] %v1158_v9  ;;  %v1159_v52 = vadd.f32 %v1135_v37, %v2262_v5  ;;  %v1296_v36 = vpop.f32.mrb[44].mxu0 }
 0x435   :  { %v1297_v63 = vpop.f32.mrb[45].mxu0 }
 0x436   :  { %1175 = vst [vmem:[%s2242_s7 + $0x68] sm:$0xff] %v1159_v52  ;;  %v1298_v18 = vadd.f32 %v1297_v63, %v1296_v36  ;;  %v1299_v51 = vpop.f32.mrb[46].mxu0 }
 0x437   :  { %v1300_v31 = vpop.f32.mrb[47].mxu0 }
 0x438   :  { %v1140_v61 = vadd.f32 %v1298_v18, %v2153_v4  ;;  %v1301_v25 = vadd.f32 %v1300_v31, %v1299_v51 }
 0x43a   :  { %v1160_v11 = vadd.f32 %v1140_v61, %v2263_v35  ;;  %v1143_v26 = vadd.f32 %v1301_v25, %v2153_v4 }
 0x43c   :  { %1176 = vst [vmem:[%s2242_s7 + $0x70] sm:$0xff] %v1160_v11  ;;  %v1161_v33 = vadd.f32 %v1143_v26, %v2264_v13 }
 0x43e   :  { %1177 = vst [vmem:[%s2242_s7 + $0x78] sm:$0xff] %v1161_v33 }

// kernel: model_forward.3
= control target key start
LH: loop header
LB: loop body
LE: loop exit
PB: predicated region body
PF: predicated region fallthrough
CT: control target
= control target key end

     0   :  { %v1841_v1 = vmov 0.0   ;;  %vm1842_vm0 = vmmov 0   ;;  %vm787_vm1 = vcmask 1040384   ;;  %vm802_vm2 = vcmask 1041408   ;;  %s2460_s6 = inlined_call_operand.vmem [shape: bf16[128,128], index: 6, kind: input, shape index: {}]   ;;  %s2461_s0 = inlined_call_operand.vmem [shape: f32[128,128], index: 0, kind: input, shape index: {}]   ;;  %s2462_s4 = inlined_call_operand.vmem [shape: f32[1,128], index: 4, kind: input, shape index: {}]   ;;  %s2463_s1 = inlined_call_operand.vmem [shape: f32[128,128], index: 1, kind: input, shape index: {}]   ;;  %s2464_s5 = inlined_call_operand.vmem [shape: bf16[128,128], index: 5, kind: input, shape index: {}]   ;;  %s2465_s2 = inlined_call_operand.vmem [shape: f32[8,128], index: 2, kind: input, shape index: {}]   ;;  %s2466_s7 = inlined_call_operand.vmem [shape: bf16[128,128], index: 7, kind: input, shape index: {}]   ;;  %s2467_s3 = inlined_call_operand.vmem [shape: f32[8,128], index: 3, kind: input, shape index: {}]   ;;  %s2468_s8 = inlined_call_operand.vmem [shape: bf16[128,128], index: 8, kind: input, shape index: {}]   ;;  %s2469_s9 = inlined_call_operand.vmem [shape: bf16[128,128], index: 9, kind: input, shape index: {}]   ;;  %s2470_s12 = inlined_call_operand.<no memory space> [shape: f32[1,1], index: 12, kind: input, shape index: {}]   ;;  %s2471_s11 = inlined_call_operand.vmem [shape: f32[1,128], index: 11, kind: input, shape index: {}]   ;;  %s2472_s13 = inlined_call_operand.vmem [shape: bf16[64,1024], index: 13, kind: input, shape index: {}]   ;;  %s2473_s15 = inlined_call_operand.vmem [shape: f32[2,1], index: 15, kind: output, shape index: {1}]   ;;  %s2474_s10 = inlined_call_operand.vmem [shape: f32[1,128], index: 10, kind: input, shape index: {}]   ;;  %s2475_s16 = inlined_call_operand.vmem [shape: f32[2,64], index: 16, kind: output, shape index: {2}]   ;;  %s2476_s14 = inlined_call_operand.vmem [shape: f32[2,1024], index: 14, kind: output, shape index: {0}]  }
   0x1   :  { %2478 = sst [smem:[#allocation3_spill]] %s2460_s6  ;;  %1605 = vmatprep.subr.bf16.mxu0 %v1841_v1  ;;  %1621 = vmatprep.mubr.msk.bf16.mxu0 %vm1842_vm0, %v1841_v1  ;;  %v53_v5 = vld [vmem:[%s2461_s0] sm:$0xff]  ;;  %v54_v6 = vld [vmem:[%s2461_s0 + $0x8] sm:$0xff]  ;;  %v55_v17 = vld [vmem:[%s2461_s0 + $0x10] sm:$0xff]  ;;  %vm814_vm3 = vcmask 1024   ;;  %vm1017_vm4 = vcmask 517120  }
   0x2   :  { %s2479_s23 = sld [smem:[#allocation3_spill]]  ;;  %v1954_v7 = vld [vmem:[%s2462_s4] ss:$0 sm:$0xff]  ;;  %v199_v11 = vld [vmem:[%s2463_s1 + $0x8] sm:$0xff]  ;;  %v56_v19 = vld [vmem:[%s2461_s0 + $0x18] sm:$0xff]  ;;  %vm1212_vm5 = vcmask 523264  }
   0x3   :  { %v1957_v8 = vadd.f32 %v1954_v7, %v53_v5  ;;  %v1960_v9 = vadd.f32 %v1954_v7, %v54_v6  ;;  %v198_v10 = vld [vmem:[%s2463_s1] sm:$0xff]  ;;  %v1806_v20 = vld [vmem:[%s2464_s5 + $0x8] sm:$0xff]   ;;  %v2002_v25 = vadd.f32 %v1954_v7, %v55_v17  ;;  %v2005_v26 = vadd.f32 %v1954_v7, %v56_v19  ;;  %v200_v27 = vld [vmem:[%s2463_s1 + $0x10] sm:$0xff] }
   0x4   :  { %v1805_v18 = vld [vmem:[%s2464_s5] sm:$0xff]   ;;  %v58_v23 = vld [vmem:[%s2461_s0 + $0x28] sm:$0xff]  ;;  %v201_v28 = vld [vmem:[%s2463_s1 + $0x18] sm:$0xff] }
   0x5   :  { %v214_v12 = vadd.f32 %v198_v10, %v1957_v8  ;;  %v215_v13 = vadd.f32 %v199_v11, %v1960_v9  ;;  %1606 = vmatpush3.bf16.msra.mxu0 %v1805_v18  ;;  %v57_v22 = vld [vmem:[%s2461_s0 + $0x20] sm:$0xff]  ;;  %v2020_v31 = vadd.f32 %v1954_v7, %v58_v23  ;;  %v1807_v32 = vld [vmem:[%s2464_s5 + $0x10] sm:$0xff]   ;;  %v203_v33 = vld [vmem:[%s2463_s1 + $0x28] sm:$0xff]  ;;  %v216_v34 = vadd.f32 %v200_v27, %v2002_v25 }
   0x6   :  { %1607 = vmatprep.subr.bf16.mxu0 %v1841_v1  ;;  %v202_v29 = vld [vmem:[%s2463_s1 + $0x20] sm:$0xff]  ;;  %v2017_v30 = vadd.f32 %v1954_v7, %v57_v22  ;;  %v217_v35 = vadd.f32 %v201_v28, %v2005_v26  ;;  %v59_v38 = vld [vmem:[%s2461_s0 + $0x30] sm:$0xff]  ;;  %v60_v39 = vld [vmem:[%s2461_s0 + $0x38] sm:$0xff] }
   0x7   :  { %v246_v15 = vpack.c.bf16 %v215_v13, %v214_v12  ;;  %v219_v37 = vadd.f32 %v203_v33, %v2020_v31  ;;  %v1808_v40 = vld [vmem:[%s2464_s5 + $0x18] sm:$0xff]   ;;  %v61_v41 = vld [vmem:[%s2461_s0 + $0x40] sm:$0xff]  ;;  %v62_v42 = vld [vmem:[%s2461_s0 + $0x48] sm:$0xff]  ;;  %v2050_v44 = vadd.f32 %v1954_v7, %v59_v38  ;;  %v2053_v45 = vadd.f32 %v1954_v7, %v60_v39 }
   0x8   :  { %v1797_v0 = vld [vmem:[%s2479_s23] sm:$0xff]   ;;  %v1798_v2 = vld [vmem:[%s2479_s23 + $0x8] sm:$0xff]   ;;  %v1799_v3 = vld [vmem:[%s2479_s23 + $0x10] sm:$0xff]   ;;  %v218_v36 = vadd.f32 %v202_v29, %v2017_v30  ;;  %v247_v43 = vpack.c.bf16 %v217_v35, %v216_v34  ;;  %v2062_v49 = vadd.f32 %v1954_v7, %v61_v41  ;;  %v2065_v50 = vadd.f32 %v1954_v7, %v62_v42 }
   0x9   :  { %1625 = vmatprep.subr.bf16.mxu1 %v1797_v0  ;;  %v1800_v4 = vld [vmem:[%s2479_s23 + $0x18] sm:$0xff]   ;;  %v1801_v14 = vld [vmem:[%s2479_s23 + $0x20] sm:$0xff]   ;;  %1641 = vmatprep.mubr.bf16.mxu1 %v246_v15  ;;  %v1802_v16 = vld [vmem:[%s2479_s23 + $0x28] sm:$0xff]  }
   0xa   :  { %1626 = vmatpush3.bf16.msra.mxu1 %v1797_v0  ;;  %v1803_v21 = vld [vmem:[%s2479_s23 + $0x30] sm:$0xff]   ;;  %v1804_v24 = vld [vmem:[%s2479_s23 + $0x38] sm:$0xff]   ;;  %1608 = vmatpush3.bf16.msra.mxu0 %v1806_v20  ;;  %v248_v46 = vpack.c.bf16 %v219_v37, %v218_v36  ;;  %v1809_v51 = vld [vmem:[%s2464_s5 + $0x20] sm:$0xff]  }
   0xb   :  { %1627 = vmatprep.subr.bf16.mxu1 %v1798_v2  ;;  %1609 = vmatprep.subr.bf16.mxu0 %v1841_v1  ;;  %v204_v47 = vld [vmem:[%s2463_s1 + $0x30] sm:$0xff]  ;;  %v205_v48 = vld [vmem:[%s2463_s1 + $0x38] sm:$0xff]  ;;  %v206_v52 = vld [vmem:[%s2463_s1 + $0x40] sm:$0xff] }
   0xc   :  { %v207_v53 = vld [vmem:[%s2463_s1 + $0x48] sm:$0xff]  ;;  %v220_v54 = vadd.f32 %v204_v47, %v2050_v44  ;;  %v221_v55 = vadd.f32 %v205_v48, %v2053_v45  ;;  %v222_v56 = vadd.f32 %v206_v52, %v2062_v49  ;;  %v63_v58 = vld [vmem:[%s2461_s0 + $0x50] sm:$0xff]  ;;  %v64_v59 = vld [vmem:[%s2461_s0 + $0x58] sm:$0xff] }
   0xd   :  { %v223_v57 = vadd.f32 %v207_v53, %v2065_v50  ;;  %v1810_v60 = vld [vmem:[%s2464_s5 + $0x28] sm:$0xff]   ;;  %v65_v61 = vld [vmem:[%s2461_s0 + $0x60] sm:$0xff]  ;;  %v2099_v0 = vadd.f32 %v1954_v7, %v63_v58  ;;  %v209_v5 = vld [vmem:[%s2463_s1 + $0x58] sm:$0xff] }
   0xe   :  { %1628 = vmatpush3.bf16.msra.mxu1 %v1798_v2  ;;  %1610 = vmatpush3.bf16.msra.mxu0 %v1807_v32  ;;  %v66_v62 = vld [vmem:[%s2461_s0 + $0x68] sm:$0xff]  ;;  %v249_v63 = vpack.c.bf16 %v221_v55, %v220_v54  ;;  %v2102_v2 = vadd.f32 %v1954_v7, %v64_v59  ;;  %v2111_v6 = vadd.f32 %v1954_v7, %v65_v61  ;;  %v1811_v11 = vld [vmem:[%s2464_s5 + $0x30] sm:$0xff]   ;;  %v210_v12 = vld [vmem:[%s2463_s1 + $0x60] sm:$0xff] }
   0xf   :  { %1629 = vmatprep.subr.bf16.mxu1 %v1799_v3  ;;  %1611 = vmatprep.subr.bf16.mxu0 %v1841_v1  ;;  %v2114_v10 = vadd.f32 %v1954_v7, %v66_v62  ;;  %v211_v13 = vld [vmem:[%s2463_s1 + $0x68] sm:$0xff]  ;;  %v68_v19 = vld [vmem:[%s2461_s0 + $0x78] sm:$0xff]  ;;  %v212_v29 = vld [vmem:[%s2463_s1 + $0x70] sm:$0xff] }
  0x10   :  { %v225_v15 = vadd.f32 %v209_v5, %v2102_v2  ;;  %v226_v17 = vadd.f32 %v210_v12, %v2111_v6  ;;  %v1812_v20 = vld [vmem:[%s2464_s5 + $0x38] sm:$0xff]   ;;  %v2175_v12 = vpack.c.bf16 %v1960_v9, %v1957_v8  ;;  %v1817_v9 = vld [vmem:[%s2466_s7 + $0x20] sm:$0xff]  }
  0x11   :  { %v227_v18 = vadd.f32 %v211_v13, %v2114_v10  ;;  %v213_v32 = vld [vmem:[%s2463_s1 + $0x78] sm:$0xff]  ;;  %v1813_v13 = vld [vmem:[%s2466_s7] sm:$0xff]  }
  0x12   :  { %1630 = vmatpush3.bf16.msra.mxu1 %v1799_v3  ;;  %1612 = vmatpush3.bf16.msra.mxu0 %v1808_v40  ;;  %v250_v3 = vpack.c.bf16 %v223_v57, %v222_v56  ;;  %v1816_v8 = vld [vmem:[%s2466_s7 + $0x18] sm:$0xff]  }
  0x13   :  { %1631 = vmatprep.subr.bf16.mxu1 %v1800_v4  ;;  %1613 = vmatprep.subr.bf16.mxu0 %v1841_v1  ;;  %v252_v28 = vpack.c.bf16 %v227_v18, %v226_v17  ;;  %v1819_v17 = vld [vmem:[%s2466_s7 + $0x30] sm:$0xff]   ;;  %v1820_v18 = vld [vmem:[%s2466_s7 + $0x38] sm:$0xff]  }
  0x16   :  { %1632 = vmatpush3.bf16.msra.mxu1 %v1800_v4  ;;  %1614 = vmatpush3.bf16.msra.mxu0 %v1809_v51  ;;  %v208_v4 = vld [vmem:[%s2463_s1 + $0x50] sm:$0xff] }
  0x17   :  { %1633 = vmatprep.subr.bf16.mxu1 %v1801_v14  ;;  %1615 = vmatprep.subr.bf16.mxu0 %v1841_v1 }
  0x1a   :  { %1634 = vmatpush3.bf16.msra.mxu1 %v1801_v14  ;;  %1616 = vmatpush3.bf16.msra.mxu0 %v1810_v60  ;;  %v224_v14 = vadd.f32 %v208_v4, %v2099_v0 }
  0x1b   :  { %1635 = vmatprep.subr.bf16.mxu1 %v1802_v16  ;;  %1617 = vmatprep.subr.bf16.mxu0 %v1841_v1 }
  0x1c   :  { %v251_v22 = vpack.c.bf16 %v225_v15, %v224_v14  ;;  %v1814_v14 = vld [vmem:[%s2466_s7 + $0x8] sm:$0xff]   ;;  %v1815_v15 = vld [vmem:[%s2466_s7 + $0x10] sm:$0xff]  }
  0x1e   :  { %1636 = vmatpush3.bf16.msra.mxu1 %v1802_v16  ;;  %v67_v16 = vld [vmem:[%s2461_s0 + $0x70] sm:$0xff]  ;;  %1618 = vmatpush3.bf16.msra.mxu0 %v1811_v11 }
  0x1f   :  { %1637 = vmatprep.subr.bf16.mxu1 %v1803_v21  ;;  %1619 = vmatprep.subr.bf16.mxu0 %v1841_v1  ;;  %v2146_v23 = vadd.f32 %v1954_v7, %v67_v16  ;;  %v1818_v16 = vld [vmem:[%s2466_s7 + $0x28] sm:$0xff]  }
  0x21   :  { %v228_v33 = vadd.f32 %v212_v29, %v2146_v23 }
  0x22   :  { %1638 = vmatpush3.bf16.msra.mxu1 %v1803_v21  ;;  %v2142_v21 = vld [vmem:[%s2465_s2] sm:$0xff]  ;;  %1620 = vmatpush3.bf16.msra.mxu0 %v1812_v20  ;;  %v2208_v20 = vpack.c.bf16 %v2020_v31, %v2017_v30 }
  0x23   :  { %1639 = vmatprep.subr.bf16.mxu1 %v1804_v24  ;;  %v109_v27 = vpack.c.bf16 %v2142_v21, %v2142_v21  ;;  %1657 = vmatprep.subr.bf16.mxu0 %v1813_v13 }
  0x25   :  { %1622 = vmatmul.mubr.bf16.vlgmr.msra.gmra.mrb[0].mxu0 %v109_v27  ;;  %v2219_v27 = vpack.c.bf16 %v2065_v50, %v2062_v49 }
  0x26   :  { %1640 = vmatpush3.bf16.msra.mxu1 %v1804_v24  ;;  %v2149_v24 = vadd.f32 %v1954_v7, %v68_v19  ;;  %1673 = vmatprep.mubr.bf16.mxu0 %v2175_v12  ;;  %v2204_v19 = vpack.c.bf16 %v2005_v26, %v2002_v25  ;;  %v2225_v25 = vpack.c.bf16 %v2102_v2, %v2099_v0 }
  0x27   :  { %1689 = vmatprep.subr.bf16.mxu1 %v1841_v1  ;;  %1658 = vmatpush3.bf16.msra.mxu0 %v1813_v13  ;;  %v2229_v26 = vpack.c.bf16 %v2114_v10, %v2111_v6  ;;  %v1828_v13 = vld [vmem:[%s2468_s8 + $0x38] sm:$0xff]  }
  0x28   :  { %v229_v34 = vadd.f32 %v213_v32, %v2149_v24  ;;  %1659 = vmatprep.subr.bf16.mxu0 %v1814_v14  ;;  %v2235_v30 = vpack.c.bf16 %v2149_v24, %v2146_v23 }
  0x29   :  { %1642 = vmatmul.mubr.bf16.vlgmr.msra.gmra.mrb[0].mxu1 %v247_v43 }
  0x2a   :  { %1645 = vmatprep.mubr.bf16.mxu1 %v248_v46  ;;  %v253_v7 = vpack.c.bf16 %v229_v34, %v228_v33 }
  0x2b   :  { %1660 = vmatpush3.bf16.msra.mxu0 %v1814_v14  ;;  %v1829_v14 = vld [vmem:[%s2469_s9] sm:$0xff]  }
  0x2c   :  { %1661 = vmatprep.subr.bf16.mxu0 %v1815_v15 }
  0x2f   :  { %1662 = vmatpush3.bf16.msra.mxu0 %v1815_v15  ;;  %v1830_v15 = vld [vmem:[%s2469_s9 + $0x8] sm:$0xff]  }
  0x30   :  { %1663 = vmatprep.subr.bf16.mxu0 %v1816_v8 }
  0x31   :  { %1646 = vmatmul.mubr.bf16.gmra.mrb[4].mxu1 %v249_v63 }
  0x32   :  { %1649 = vmatprep.mubr.bf16.mxu1 %v250_v3 }
  0x33   :  { %1664 = vmatpush3.bf16.msra.mxu0 %v1816_v8  ;;  %v1831_v8 = vld [vmem:[%s2469_s9 + $0x10] sm:$0xff]  }
  0x34   :  { %1665 = vmatprep.subr.bf16.mxu0 %v1817_v9 }
  0x37   :  { %1666 = vmatpush3.bf16.msra.mxu0 %v1817_v9  ;;  %v1832_v9 = vld [vmem:[%s2469_s9 + $0x18] sm:$0xff]  }
  0x38   :  { %1667 = vmatprep.subr.bf16.mxu0 %v1818_v16 }
  0x39   :  { %1650 = vmatmul.mubr.bf16.gmra.mrb[8].mxu1 %v251_v22  ;;  %v2215_v22 = vpack.c.bf16 %v2053_v45, %v2050_v44  ;;  %v618_v44 = vld [vmem:[%s2467_s3] sm:$0xff] }
  0x3a   :  { %1653 = vmatprep.mubr.bf16.mxu1 %v252_v28 }
  0x3b   :  { %1668 = vmatpush3.bf16.msra.mxu0 %v1818_v16  ;;  %v1833_v16 = vld [vmem:[%s2469_s9 + $0x20] sm:$0xff]  }
  0x3c   :  { %1669 = vmatprep.subr.bf16.mxu0 %v1819_v17 }
  0x3f   :  { %1670 = vmatpush3.bf16.msra.mxu0 %v1819_v17  ;;  %v1834_v17 = vld [vmem:[%s2469_s9 + $0x28] sm:$0xff]  }
  0x40   :  { %1671 = vmatprep.subr.bf16.mxu0 %v1820_v18 }
  0x41   :  { %1654 = vmatmul.mubr.bf16.gmra.mrb[12].mxu1 %v253_v7 }
  0x42   :  { %1705 = vmatprep.mubr.msk.bf16.mxu1 %vm1842_vm0, %v1841_v1 }
  0x43   :  { %1672 = vmatpush3.bf16.msra.mxu0 %v1820_v18 }
  0x44   :  { %1709 = vmatprep.subr.bf16.mxu0 %v1841_v1 }
  0x46   :  { %1674 = vmatmul.mubr.bf16.vlgmr.msra.gmra.mrb[4].mxu0 %v2204_v19 }
  0x47   :  { %1677 = vmatprep.mubr.bf16.mxu0 %v2208_v20 }
  0x4e   :  { %1678 = vmatmul.mubr.bf16.gmra.mrb[8].mxu0 %v2215_v22 }
  0x4f   :  { %1681 = vmatprep.mubr.bf16.mxu0 %v2219_v27 }
  0x56   :  { %1682 = vmatmul.mubr.bf16.gmra.mrb[12].mxu0 %v2225_v25 }
  0x57   :  { %1685 = vmatprep.mubr.bf16.mxu0 %v2229_v26 }
  0x5e   :  { %1686 = vmatmul.mubr.bf16.gmra.mrb[16].mxu0 %v2235_v30 }
  0x5f   :  { %1725 = vmatprep.mubr.msk.bf16.mxu0 %vm1842_vm0, %v1841_v1 }
  0xf8   :  { %v192_v52 = vpop.f32.mrb[0].mxu0 }
  0xf9   :  { %v1623_v54 = vpop.f32.mrb[1].mxu0  ;;  %v568_v11 = vpack.c.bf16 %v192_v52, %v192_v52 }
  0xfa   :  { %v195_v56 = vpop.f32.mrb[2].mxu0 }
  0xfb   :  { %v1624_v59 = vpop.f32.mrb[3].mxu0 }
  0xfc   :  { %v1643_v35 = vpop.f32.mrb[0].mxu1 }
  0xfd   :  { %v336_v36 = vpop.f32.mrb[1].mxu1 }
  0xfe   :  { %v1644_v37 = vpop.f32.mrb[2].mxu1 }
  0xff   :  { %v570_v38 = vpack.c.bf16 %v1644_v37, %v1643_v35  ;;  %v339_v39 = vpop.f32.mrb[3].mxu1 }
 0x100   :  { %v569_v40 = vpack.c.bf16 %v339_v39, %v336_v36 }
 0x102   :  { %1690 = vmatpush3.bf16.xpose.msra.mxu1 %v569_v40 }
 0x103   :  { %1691 = vmatprep.subr.bf16.mxu1 %v1841_v1 }
 0x104   :  { %v1647_v41 = vpop.f32.mrb[4].mxu1 }
 0x105   :  { %v352_v42 = vpop.f32.mrb[5].mxu1 }
 0x106   :  { %v1648_v43 = vpop.f32.mrb[6].mxu1 }
 0x107   :  { %v572_v46 = vpack.c.bf16 %v1648_v43, %v1647_v41  ;;  %v355_v47 = vpop.f32.mrb[7].mxu1 }
 0x108   :  { %v571_v48 = vpack.c.bf16 %v355_v47, %v352_v42 }
 0x10a   :  { %1692 = vmatpush3.bf16.xpose.msra.mxu1 %v570_v38 }
 0x10b   :  { %1693 = vmatprep.subr.bf16.mxu1 %v1841_v1 }
 0x10c   :  { %v1651_v51 = vpop.f32.mrb[8].mxu1 }
 0x10d   :  { %v368_v53 = vpop.f32.mrb[9].mxu1 }
 0x10e   :  { %v1652_v55 = vpop.f32.mrb[10].mxu1 }
 0x10f   :  { %v574_v57 = vpack.c.bf16 %v1652_v55, %v1651_v51  ;;  %v371_v58 = vpop.f32.mrb[11].mxu1 }
 0x110   :  { %v573_v60 = vpack.c.bf16 %v371_v58, %v368_v53 }
 0x112   :  { %1694 = vmatpush3.bf16.xpose.msra.mxu1 %v571_v48 }
 0x113   :  { %1695 = vmatprep.subr.bf16.mxu1 %v1841_v1 }
 0x114   :  { %v1655_v61 = vpop.f32.mrb[12].mxu1 }
 0x115   :  { %v384_v62 = vpop.f32.mrb[13].mxu1 }
 0x116   :  { %v1656_v63 = vpop.f32.mrb[14].mxu1 }
 0x117   :  { %v576_v3 = vpack.c.bf16 %v1656_v63, %v1655_v61  ;;  %v387_v4 = vpop.f32.mrb[15].mxu1  ;;  %v1823_v63 = vld [vmem:[%s2468_s8 + $0x10] sm:$0xff]  }
 0x118   :  { %v575_v5 = vpack.c.bf16 %v387_v4, %v384_v62  ;;  %v1822_v62 = vld [vmem:[%s2468_s8 + $0x8] sm:$0xff]   ;;  %v1825_v4 = vld [vmem:[%s2468_s8 + $0x20] sm:$0xff]  }
 0x119   :  { %v1675_v6 = vpop.f32.mrb[4].mxu0 }
 0x11a   :  { %1696 = vmatpush3.bf16.xpose.msra.mxu1 %v572_v46  ;;  %v505_v10 = vpop.f32.mrb[5].mxu0 }
 0x11b   :  { %1697 = vmatprep.subr.bf16.mxu1 %v1841_v1  ;;  %v1676_v23 = vpop.f32.mrb[6].mxu0 }
 0x11c   :  { %v631_v24 = vpack.c.bf16 %v1676_v23, %v1675_v6  ;;  %v508_v28 = vpop.f32.mrb[7].mxu0 }
 0x11d   :  { %v630_v29 = vpack.c.bf16 %v508_v28, %v505_v10  ;;  %v1471_v28 = vld [vmem:[%s2471_s11] ss:$0 sm:$0xff] }
 0x11f   :  { %1710 = vmatpush3.bf16.msra.mxu0 %v630_v29 }
 0x120   :  { %1711 = vmatprep.subr.bf16.mxu0 %v1841_v1 }
 0x121   :  { %v1679_v32 = vpop.f32.mrb[8].mxu0 }
 0x122   :  { %1698 = vmatpush3.bf16.xpose.msra.mxu1 %v573_v60  ;;  %v521_v33 = vpop.f32.mrb[9].mxu0  ;;  %v1821_v60 = vld [vmem:[%s2468_s8] sm:$0xff]  }
 0x123   :  { %1699 = vmatprep.subr.bf16.mxu1 %v1841_v1  ;;  %v1680_v34 = vpop.f32.mrb[10].mxu0  ;;  %1712 = vmatpush3.bf16.msra.mxu0 %v631_v24 }
 0x124   :  { %v633_v7 = vpack.c.bf16 %v1680_v34, %v1679_v32  ;;  %v524_v35 = vpop.f32.mrb[11].mxu0  ;;  %1713 = vmatprep.subr.bf16.mxu0 %v1841_v1 }
 0x125   :  { %v632_v36 = vpack.c.bf16 %v524_v35, %v521_v33 }
 0x127   :  { %1714 = vmatpush3.bf16.msra.mxu0 %v632_v36 }
 0x128   :  { %1715 = vmatprep.subr.bf16.mxu0 %v1841_v1 }
 0x129   :  { %v1683_v37 = vpop.f32.mrb[12].mxu0 }
 0x12a   :  { %1700 = vmatpush3.bf16.xpose.msra.mxu1 %v574_v57  ;;  %v537_v38 = vpop.f32.mrb[13].mxu0 }
 0x12b   :  { %1701 = vmatprep.subr.bf16.mxu1 %v1841_v1  ;;  %v1684_v39 = vpop.f32.mrb[14].mxu0  ;;  %1716 = vmatpush3.bf16.msra.mxu0 %v633_v7  ;;  %v1019_v7 = vld [vmem:[%s2472_s13] sm:$0xff] }
 0x12c   :  { %v635_v40 = vpack.c.bf16 %v1684_v39, %v1683_v37  ;;  %v540_v41 = vpop.f32.mrb[15].mxu0  ;;  %1717 = vmatprep.subr.bf16.mxu0 %v1841_v1 }
 0x12d   :  { %v634_v42 = vpack.c.bf16 %v540_v41, %v537_v38 }
 0x12f   :  { %1718 = vmatpush3.bf16.msra.mxu0 %v634_v42  ;;  %v1027_v42 = vld [vmem:[%s2472_s13 + $0x40] sm:$0xff] }
 0x130   :  { %1719 = vmatprep.subr.bf16.mxu0 %v1841_v1 }
 0x131   :  { %v1687_v47 = vpop.f32.mrb[16].mxu0 }
 0x132   :  { %1702 = vmatpush3.bf16.xpose.msra.mxu1 %v575_v5  ;;  %v553_v48 = vpop.f32.mrb[17].mxu0  ;;  %v1826_v5 = vld [vmem:[%s2468_s8 + $0x28] sm:$0xff]  }
 0x133   :  { %1703 = vmatprep.subr.bf16.mxu1 %v1841_v1  ;;  %v1688_v52 = vpop.f32.mrb[18].mxu0  ;;  %1720 = vmatpush3.bf16.msra.mxu0 %v635_v40  ;;  %v1473_v40 = vld [vmem:[%s2474_s10] ss:$0 sm:$0xff] }
 0x134   :  { %v637_v53 = vpack.c.bf16 %v1688_v52, %v1687_v47  ;;  %v556_v54 = vpop.f32.mrb[19].mxu0  ;;  %1721 = vmatprep.subr.bf16.mxu0 %v1841_v1  ;;  %v1032_v52 = vld [vmem:[%s2472_s13 + $0x68] sm:$0xff] }
 0x135   :  { %v636_v55 = vpack.c.bf16 %v556_v54, %v553_v48 }
 0x137   :  { %1722 = vmatpush3.bf16.msra.mxu0 %v636_v55 }
 0x138   :  { %1723 = vmatprep.subr.bf16.mxu0 %v1841_v1 }
 0x13a   :  { %1704 = vmatpush3.bf16.xpose.msra.mxu1 %v576_v3  ;;  %v1824_v3 = vld [vmem:[%s2468_s8 + $0x18] sm:$0xff]  }
 0x13b   :  { %1749 = vmatprep.subr.bf16.mxu1 %v1841_v1  ;;  %1724 = vmatpush3.bf16.msra.mxu0 %v637_v53 }
 0x13c   :  { %1729 = vmatprep.subr.bf16.mxu0 %v1841_v1 }
 0x141   :  { %1706 = vmatmul.mubr.bf16.vlgmr.msra.gmra.mrb[16].mxu1 %v568_v11  ;;  %v1827_v11 = vld [vmem:[%s2468_s8 + $0x30] sm:$0xff]  }
 0x142   :  { %1765 = vmatprep.mubr.msk.bf16.mxu1 %vm1842_vm0, %v1841_v1  ;;  %1750 = vmatpush3.bf16.msra.mxu1 %v1829_v14  ;;  %v1047_v14 = vld [vmem:[%s2472_s13 + $0xe0] sm:$0xff] }
 0x143   :  { %1751 = vmatprep.subr.bf16.mxu1 %v1841_v1 }
 0x146   :  { %1752 = vmatpush3.bf16.msra.mxu1 %v1830_v15  ;;  %v1044_v15 = vld [vmem:[%s2472_s13 + $0xc8] sm:$0xff] }
 0x147   :  { %1753 = vmatprep.subr.bf16.mxu1 %v1841_v1 }
 0x14a   :  { %1754 = vmatpush3.bf16.msra.mxu1 %v1831_v8 }
 0x14b   :  { %1755 = vmatprep.subr.bf16.mxu1 %v1841_v1 }
 0x14e   :  { %1756 = vmatpush3.bf16.msra.mxu1 %v1832_v9  ;;  %v1048_v9 = vld [vmem:[%s2472_s13 + $0xe8] sm:$0xff] }
 0x14f   :  { %1757 = vmatprep.subr.bf16.mxu1 %v1841_v1 }
 0x152   :  { %1758 = vmatpush3.bf16.msra.mxu1 %v1833_v16 }
 0x153   :  { %1759 = vmatprep.subr.bf16.mxu1 %v1841_v1 }
 0x156   :  { %1760 = vmatpush3.bf16.msra.mxu1 %v1834_v17  ;;  %v1508_v17 = vcombine.low %v1044_v15, %v1048_v9 }
 0x157   :  { %1761 = vmatprep.subr.bf16.mxu1 %v1841_v1 }
 0x214   :  { %v611_v31 = vpop.f32.mrb[16].mxu1 }
 0x215   :  { %v617_v45 = vmul.f32 0.088388346, %v611_v31  ;;  %v1707_v49 = vpop.f32.mrb[17].mxu1 }
 0x216   :  { %v614_v50 = vpop.f32.mrb[18].mxu1 }
 0x217   :  { %v1708_v0 = vpop.f32.mrb[19].mxu1  ;;  %v619_v2 = vadd.f32 %v618_v44, %v617_v45  ;;  %v1835_v50 = vld [vmem:[%s2469_s9 + $0x30] sm:$0xff]  }
 0x218   :  { %1762 = vmatpush3.bf16.msra.mxu1 %v1835_v50  ;;  %v1026_v50 = vld [vmem:[%s2472_s13 + $0x38] sm:$0xff] }
 0x219   :  { %620 = vmax.xlane.f32.xlu0 %v619_v2  ;;  %1763 = vmatprep.subr.bf16.mxu1 %v1841_v1 }
 0x2a6   :  { %v621_v43 = vpop.xlane.xlu0 %620 }
 0x2a7   :  { %v622_v46 = vsub.f32 %v619_v2, %v621_v43  ;;  %v1031_v43 = vld [vmem:[%s2472_s13 + $0x60] sm:$0xff] }
 0x2a8   :  { %v1491_v55 = vcombine.high %v1027_v42, %v1031_v43 }
 0x2a9   :  { %v623_v51 = vmul.f32 1.442695, %v622_v46 }
 0x2ab   :  { %1837 = vpow2.f32 %v623_v51  ;;  %v1028_v51 = vld [vmem:[%s2472_s13 + $0x48] sm:$0xff] }
 0x2b5   :  { %v1838_v56 = vpop.eup %1837 }
 0x2b6   :  { %625 = vadd.xlane.f32.xlu0 %v1838_v56 }
 0x343   :  { %v626_v57 = vpop.xlane.xlu0 %625 }
 0x344   :  { %1839 = vrcp.f32 %v626_v57  ;;  %v1039_v57 = vld [vmem:[%s2472_s13 + $0xa0] sm:$0xff] }
 0x34e   :  { %v1840_v58 = vpop.eup %1839 }
 0x34f   :  { %v628_v59 = vmul.f32 %v1840_v58, %v1838_v56  ;;  %v1035_v56 = vld [vmem:[%s2472_s13 + $0x80] sm:$0xff] }
 0x351   :  { %v629_v61 = vpack.c.bf16 %v628_v59, %v628_v59  ;;  %v1493_v59 = vcombine.high %v1028_v51, %v1032_v52 }
 0x353   :  { %1726 = vmatmul.mubr.bf16.vlgmr.msra.gmra.mrb[20].mxu0 %v629_v61  ;;  %v1036_v61 = vld [vmem:[%s2472_s13 + $0x88] sm:$0xff] }
 0x354   :  { %1730 = vmatpush3.bf16.msra.mxu0 %v1821_v60  ;;  %1745 = vmatprep.mubr.msk.bf16.mxu0 %vm1842_vm0, %v1841_v1  ;;  %v1490_v60 = vcombine.low %v1027_v42, %v1031_v43  ;;  %v1045_v42 = vld [vmem:[%s2472_s13 + $0xd0] sm:$0xff] }
 0x355   :  { %1731 = vmatprep.subr.bf16.mxu0 %v1841_v1  ;;  %v1049_v43 = vld [vmem:[%s2472_s13 + $0xf0] sm:$0xff] }
 0x358   :  { %1732 = vmatpush3.bf16.msra.mxu0 %v1822_v62  ;;  %v1040_v62 = vld [vmem:[%s2472_s13 + $0xa8] sm:$0xff] }
 0x359   :  { %1733 = vmatprep.subr.bf16.mxu0 %v1841_v1 }
 0x35c   :  { %1734 = vmatpush3.bf16.msra.mxu0 %v1823_v63  ;;  %v1499_v63 = vcombine.high %v1035_v56, %v1039_v57 }
 0x35d   :  { %1735 = vmatprep.subr.bf16.mxu0 %v1841_v1 }
 0x360   :  { %1736 = vmatpush3.bf16.msra.mxu0 %v1824_v3  ;;  %v1492_v3 = vcombine.low %v1028_v51, %v1032_v52  ;;  %v1511_v52 = vcombine.high %v1045_v42, %v1049_v43 }
 0x361   :  { %1737 = vmatprep.subr.bf16.mxu0 %v1841_v1 }
 0x364   :  { %1738 = vmatpush3.bf16.msra.mxu0 %v1825_v4  ;;  %v1501_v4 = vcombine.high %v1036_v61, %v1040_v62 }
 0x365   :  { %1739 = vmatprep.subr.bf16.mxu0 %v1841_v1 }
 0x368   :  { %1740 = vmatpush3.bf16.msra.mxu0 %v1826_v5  ;;  %v1498_v5 = vcombine.low %v1035_v56, %v1039_v57  ;;  %v1844_v56 = vmov 1983009808  }
 0x369   :  { %1741 = vmatprep.subr.bf16.mxu0 %v1841_v1  ;;  %v1391_v57 = vunpack.c.l.s4 %v1844_v56 }
 0x36c   :  { %1742 = vmatpush3.bf16.msra.mxu0 %v1827_v11  ;;  %v1500_v11 = vcombine.low %v1036_v61, %v1040_v62 }
 0x36d   :  { %1743 = vmatprep.subr.bf16.mxu0 %v1841_v1 }
 0x370   :  { %1744 = vmatpush3.bf16.msra.mxu0 %v1828_v13  ;;  %v1043_v13 = vld [vmem:[%s2472_s13 + $0xc0] sm:$0xff] }
 0x371   :  { %1769 = vmatprep.subr.bf16.mxu0 %v1841_v1  ;;  %v1507_v8 = vcombine.high %v1043_v13, %v1047_v14  ;;  %v1506_v16 = vcombine.low %v1043_v13, %v1047_v14 }
 0x426   :  { %v672_v18 = vpop.f32.mrb[20].mxu0 }
 0x427   :  { %v694_v31 = vpack.c.bf16 %v672_v18, %v672_v18  ;;  %v1727_v44 = vpop.f32.mrb[21].mxu0  ;;  %v1509_v18 = vcombine.high %v1044_v15, %v1048_v9 }
 0x428   :  { %v675_v45 = vpop.f32.mrb[22].mxu0  ;;  %v1025_v44 = vld [vmem:[%s2472_s13 + $0x30] sm:$0xff] }
 0x429   :  { %v1728_v49 = vpop.f32.mrb[23].mxu0  ;;  %1746 = vmatmul.mubr.bf16.vlgmr.msra.gmra.mrb[24].mxu0 %v694_v31  ;;  %v1021_v31 = vld [vmem:[%s2472_s13 + $0x10] sm:$0xff]  ;;  %v1022_v45 = vld [vmem:[%s2472_s13 + $0x18] sm:$0xff] }
 0x42a   :  { %1770 = vmatpush3.bf16.xpose.msra.mxu0 %v2175_v12  ;;  %1777 = vmatprep.mubr.msk.bf16.mxu0 %vm1842_vm0, %v1841_v1  ;;  %v1836_v12 = vld [vmem:[%s2469_s9 + $0x38] sm:$0xff]   ;;  %v1487_v49 = vcombine.high %v1021_v31, %v1025_v44 }
 0x42b   :  { %1771 = vmatprep.subr.bf16.mxu0 %v1841_v1  ;;  %1764 = vmatpush3.bf16.msra.mxu1 %v1836_v12  ;;  %v1486_v12 = vcombine.low %v1021_v31, %v1025_v44 }
 0x42c   :  { %1781 = vmatprep.subr.bf16.mxu1 %v1841_v1 }
 0x432   :  { %1772 = vmatpush3.bf16.xpose.msra.mxu0 %v2204_v19  ;;  %v22_v19 = vstv %s2470_s12 }
 0x433   :  { %1773 = vmatprep.subr.bf16.mxu0 %v1841_v1  ;;  %23 = vst [vmem:[#allocation2] sm:$0x1] %v22_v19  ;;  %v1488_v19 = vcombine.low %v1022_v45, %v1026_v50 }
 0x43a   :  { %1774 = vmatpush3.bf16.xpose.msra.mxu0 %v2208_v20  ;;  %v1472_v37 = vld [vmem:[#allocation2] ss:$0 sm:$0xff] }
 0x43b   :  { %1775 = vmatprep.subr.bf16.mxu0 %v1841_v1 }
 0x442   :  { %1776 = vmatpush3.bf16.xpose.msra.mxu0 %v2215_v22 }
 0x4fc   :  { %v777_v20 = vpop.f32.mrb[24].mxu0 }
 0x4fd   :  { %v783_v22 = vadd.f32 %v777_v20, %v2142_v21  ;;  %v1747_v0 = vpop.f32.mrb[25].mxu0  ;;  %v1489_v20 = vcombine.high %v1022_v45, %v1026_v50 }
 0x4fe   :  { %v780_v2 = vpop.f32.mrb[26].mxu0 }
 0x4ff   :  { %v789_v6 = vrot.slane %v783_v22, 1  ;;  %v791_v10 = vrot.slane %v783_v22, 4  ;;  %v1748_v23 = vpop.f32.mrb[27].mxu0  ;;  %v785_v24 = vrot.slane %v783_v22, 3 }
 0x500   :  { %v1029_v23 = vld [vmem:[%s2472_s13 + $0x50] sm:$0xff] }
 0x501   :  { %v793_v29 = vsel %vm787_vm1, %v789_v6, %v791_v10  ;;  %v788_v32 = vsel %vm787_vm1, %v783_v22, %v785_v24  ;;  %v1843_v22 = vmov 0  }
 0x502   :  { %v832_v33 = vpack.c.bf16 %v793_v29, %v793_v29  ;;  %v801_v34 = vmul.f32 %v1471_v28, %v788_v32  ;;  %v1033_v32 = vld [vmem:[%s2472_s13 + $0x70] sm:$0xff] }
 0x504   :  { %1766 = vmatmul.mubr.bf16.vlgmr.msra.gmra.mrb[20].mxu1 %v832_v33  ;;  %v803_v21 = vsel %vm802_vm2, %v801_v34, 0.0  ;;  %v1030_v33 = vld [vmem:[%s2472_s13 + $0x58] sm:$0xff] }
 0x505   :  { %804 = vadd.xlane.f32.xlu1 %v803_v21  ;;  %1782 = vmatpush3.bf16.xpose.msra.mxu1 %v2219_v27  ;;  %v1023_v27 = vld [vmem:[%s2472_s13 + $0x20] sm:$0xff]  ;;  %v1034_v34 = vld [vmem:[%s2472_s13 + $0x78] sm:$0xff] }
 0x506   :  { %1783 = vmatprep.subr.bf16.mxu1 %v1841_v1  ;;  %1789 = vmatprep.mubr.msk.bf16.mxu1 %vm1842_vm0, %v1841_v1  ;;  %v1482_v35 = vcombine.low %v1019_v7, %v1023_v27  ;;  %v1483_v36 = vcombine.high %v1019_v7, %v1023_v27 }
 0x508   :  { %1216 = vmatprep.subr.bf16.mxu0 %v1483_v36  ;;  %v1497_v36 = vcombine.high %v1030_v33, %v1034_v34 }
 0x50d   :  { %1784 = vmatpush3.bf16.xpose.msra.mxu1 %v2225_v25  ;;  %v1020_v25 = vld [vmem:[%s2472_s13 + $0x8] sm:$0xff] }
 0x50e   :  { %1785 = vmatprep.subr.bf16.mxu1 %v1841_v1 }
 0x515   :  { %1786 = vmatpush3.bf16.xpose.msra.mxu1 %v2229_v26 }
 0x516   :  { %1787 = vmatprep.subr.bf16.mxu1 %v1841_v1  ;;  %v1024_v1 = vld [vmem:[%s2472_s13 + $0x28] sm:$0xff] }
 0x517   :  { %v1484_v26 = vcombine.low %v1020_v25, %v1024_v1 }
 0x51d   :  { %1788 = vmatpush3.bf16.xpose.msra.mxu1 %v2235_v30  ;;  %v1485_v30 = vcombine.high %v1020_v25, %v1024_v1  ;;  %v1037_v1 = vld [vmem:[%s2472_s13 + $0x90] sm:$0xff] }
 0x51f   :  { %1257 = vmatprep.subr.bf16.mxu1 %v1485_v30  ;;  %v1038_v30 = vld [vmem:[%s2472_s13 + $0x98] sm:$0xff] }
 0x592   :  { %v805_v38 = vpop.xlane.xlu1 %804 }
 0x593   :  { %v813_v39 = vadd.f32 %v1472_v37, %v805_v38  ;;  %v1042_v37 = vld [vmem:[%s2472_s13 + $0xb8] sm:$0xff]  ;;  %v1494_v38 = vcombine.low %v1029_v23, %v1033_v32 }
 0x594   :  { %v1504_v51 = vcombine.low %v1038_v30, %v1042_v37 }
 0x595   :  { %815 = vst.msk [vmem:[%s2473_s15] sm:$0x3] %vm814_vm3, %v813_v39  ;;  %v1496_v39 = vcombine.low %v1030_v33, %v1034_v34 }
 0x5d7   :  { %v922_v41 = vpop.f32.mrb[20].mxu1 }
 0x5d8   :  { %v923_v46 = vadd.f32 %v1473_v40, %v922_v41  ;;  %v1767_v47 = vpop.f32.mrb[21].mxu1  ;;  %v1505_v41 = vcombine.high %v1038_v30, %v1042_v37 }
 0x5d9   :  { %v925_v48 = vpop.f32.mrb[22].mxu1  ;;  %v1050_v47 = vld [vmem:[%s2472_s13 + $0xf8] sm:$0xff] }
 0x5da   :  { %v928_v53 = vpack.c.bf16 %v923_v46, %v923_v46  ;;  %v1768_v54 = vpop.f32.mrb[23].mxu1  ;;  %v1046_v46 = vld [vmem:[%s2472_s13 + $0xd8] sm:$0xff] }
 0x5db   :  { %v1510_v54 = vcombine.low %v1045_v42, %v1049_v43 }
 0x5dc   :  { %v970_v58 = vshrl.u32 %v928_v53, 16  ;;  %1778 = vmatmul.mubr.bf16.vlgmr.msra.gmra.mrb[28].mxu0 %v928_v53  ;;  %v1513_v53 = vcombine.high %v1046_v46, %v1050_v47 }
 0x5dd   :  { %1217 = vmatpush1.bf16.msra.mxu0 %v1482_v35  ;;  %1248 = vmatprep.mubr.bf16.mxu0 %v1843_v22  ;;  %v1495_v35 = vcombine.high %v1029_v23, %v1033_v32 }
 0x5de   :  { %1790 = vmatmul.mubr.bf16.vlgmr.msra.gmra.mrb[24].mxu1 %v970_v58  ;;  %1218 = vmatprep.subr.bf16.mxu0 %v1491_v55  ;;  %v1512_v55 = vcombine.low %v1046_v46, %v1050_v47  ;;  %v1393_v58 = vlaneseq }
 0x5df   :  { %1258 = vmatpush1.bf16.msra.mxu1 %v1484_v26  ;;  %1289 = vmatprep.mubr.bf16.mxu1 %v1843_v22  ;;  %v1041_v26 = vld [vmem:[%s2472_s13 + $0xb0] sm:$0xff] }
 0x5e0   :  { %1259 = vmatprep.subr.bf16.mxu1 %v1493_v59  ;;  %v1503_v40 = vcombine.high %v1037_v1, %v1041_v26  ;;  %v1502_v48 = vcombine.low %v1037_v1, %v1041_v26  ;;  %v1392_v59 = vunpack.c.0.s8 %v1391_v57 }
 0x5e1   :  { %1219 = vmatpush1.bf16.msra.mxu0 %v1490_v60  ;;  %v1394_v60 = vshrl.u32 %v1393_v58, 7 }
 0x5e2   :  { %1220 = vmatprep.subr.bf16.mxu0 %v1499_v63 }
 0x5e3   :  { %1260 = vmatpush1.bf16.msra.mxu1 %v1492_v3  ;;  %v1395_v63 = vsub.s32 %v1392_v59, %v1394_v60 }
 0x5e4   :  { %1261 = vmatprep.subr.bf16.mxu1 %v1501_v4 }
 0x5e5   :  { %1221 = vmatpush1.bf16.msra.mxu0 %v1498_v5 }
 0x5e6   :  { %1222 = vmatprep.subr.bf16.mxu0 %v1507_v8 }
 0x5e7   :  { %1262 = vmatpush1.bf16.msra.mxu1 %v1500_v11 }
 0x5e8   :  { %1263 = vmatprep.subr.bf16.mxu1 %v1509_v18 }
 0x5e9   :  { %1223 = vmatpush1.bf16.msra.mxu0 %v1506_v16 }
 0x5ea   :  { %1298 = vmatprep.subr.bf16.mxu0 %v1487_v49 }
 0x5eb   :  { %1264 = vmatpush1.bf16.msra.mxu1 %v1508_v17 }
 0x5ec   :  { %1339 = vmatprep.subr.bf16.mxu1 %v1489_v20 }
 0x6af   :  { %v963_v0 = vpop.f32.mrb[28].mxu0 }
 0x6b0   :  { %v1779_v2 = vpop.f32.mrb[29].mxu0 }
 0x6b1   :  { %v966_v6 = vpop.f32.mrb[30].mxu0  ;;  %v1007_v10 = vpop.f32.mrb[24].mxu1 }
 0x6b2   :  { %v1014_v24 = vrot.slane %v1007_v10, 7  ;;  %v1780_v28 = vpop.f32.mrb[31].mxu0  ;;  %v1791_v29 = vpop.f32.mrb[25].mxu1 }
 0x6b3   :  { %v1010_v21 = vpop.f32.mrb[26].mxu1 }
 0x6b4   :  { %v1016_v7 = vsel %vm787_vm1, %v963_v0, %v1014_v24  ;;  %v1792_v27 = vpop.f32.mrb[27].mxu1 }
 0x6b5   :  { %1018 = vst.msk [vmem:[%s2475_s16] sm:$0x3] %vm1017_vm4, %v1016_v7  ;;  %v1051_v25 = vpack.c.bf16 %v1016_v7, %v1016_v7 }
 0x6b7   :  { %1514 = vmatmul.mubr.msk.bf16.vlgmr.msra.gmra.mrb[32].mxu0 %vm1212_vm5, %v1051_v25  ;;  %1515 = vmatmul.mubr.msk.bf16.vlgmr.msra.gmra.mrb[28].mxu1 %vm1212_vm5, %v1051_v25 }
 0x6b8   :  { %1299 = vmatpush1.bf16.msra.mxu0 %v1486_v12  ;;  %1340 = vmatpush1.bf16.msra.mxu1 %v1488_v19 }
 0x6b9   :  { %1300 = vmatprep.subr.bf16.mxu0 %v1495_v35  ;;  %1341 = vmatprep.subr.bf16.mxu1 %v1497_v36 }
 0x6ba   :  { %1330 = vmatprep.mubr.bf16.mxu0 %v1843_v22  ;;  %1371 = vmatprep.mubr.bf16.mxu1 %v1843_v22 }
 0x6bc   :  { %1301 = vmatpush1.bf16.msra.mxu0 %v1494_v38  ;;  %1342 = vmatpush1.bf16.msra.mxu1 %v1496_v39 }
 0x6bd   :  { %1302 = vmatprep.subr.bf16.mxu0 %v1503_v40  ;;  %1343 = vmatprep.subr.bf16.mxu1 %v1505_v41 }
 0x6c0   :  { %1303 = vmatpush1.bf16.msra.mxu0 %v1502_v48  ;;  %1344 = vmatpush1.bf16.msra.mxu1 %v1504_v51 }
 0x6c1   :  { %1304 = vmatprep.subr.bf16.mxu0 %v1511_v52  ;;  %1345 = vmatprep.subr.bf16.mxu1 %v1513_v53 }
 0x6c4   :  { %1305 = vmatpush1.bf16.msra.mxu0 %v1510_v54  ;;  %1346 = vmatpush1.bf16.msra.mxu1 %v1512_v55 }
 0x6c7   :  { %1516 = vmatmul.mubr.msk.bf16.vlgmr.msra.gmra.mrb[36].mxu0 %vm1212_vm5, %v1051_v25  ;;  %1517 = vmatmul.mubr.msk.bf16.vlgmr.msra.gmra.mrb[32].mxu1 %vm1212_vm5, %v1051_v25 }
 0x78a   :  { %v1250_v61 = vpop.f32.mrb[32].mxu0  ;;  %v1291_v62 = vpop.f32.mrb[28].mxu1 }
 0x78b   :  { %v1252_v3 = vpop.f32.mrb[33].mxu0  ;;  %v1293_v4 = vpop.f32.mrb[29].mxu1 }
 0x78c   :  { %v1388_v5 = vcombine.low %v1250_v61, %v1252_v3  ;;  %v1389_v11 = vcombine.low %v1291_v62, %v1293_v4  ;;  %v1254_v13 = vpop.f32.mrb[34].mxu0  ;;  %v1295_v14 = vpop.f32.mrb[30].mxu1 }
 0x78d   :  { %v1255_v15 = vpop.f32.mrb[35].mxu0  ;;  %v1296_v8 = vpop.f32.mrb[31].mxu1 }
 0x78e   :  { %v1396_v9 = vrot.slane %v1388_v5, %v1395_v63  ;;  %v1403_v16 = vrot.slane %v1389_v11, %v1395_v63 }
 0x790   :  { %v1404_v17 = vcombine.low %v1396_v9, %v1403_v16 }
 0x792   :  { %1424 = vst [vmem:[%s2476_s14] sm:$0xff] %v1404_v17 }
 0x79a   :  { %v1332_v18 = vpop.f32.mrb[36].mxu0  ;;  %v1373_v31 = vpop.f32.mrb[32].mxu1 }
 0x79b   :  { %v1334_v44 = vpop.f32.mrb[37].mxu0  ;;  %v1375_v45 = vpop.f32.mrb[33].mxu1 }
 0x79c   :  { %v1405_v49 = vcombine.low %v1332_v18, %v1334_v44  ;;  %v1406_v50 = vcombine.low %v1373_v31, %v1375_v45  ;;  %v1336_v12 = vpop.f32.mrb[38].mxu0  ;;  %v1377_v19 = vpop.f32.mrb[34].mxu1 }
 0x79d   :  { %v1337_v20 = vpop.f32.mrb[39].mxu0  ;;  %v1378_v22 = vpop.f32.mrb[35].mxu1 }
 0x79e   :  { %v1413_v0 = vrot.slane %v1405_v49, %v1395_v63  ;;  %v1420_v2 = vrot.slane %v1406_v50, %v1395_v63 }
 0x7a0   :  { %v1421_v6 = vcombine.low %v1413_v0, %v1420_v2 }
 0x7a2   :  { %1425 = vst [vmem:[%s2476_s14 + $0x8] sm:$0xff] %v1421_v6 }

</bundles_post_ra>
